<compile_context>
chip_gen: v7x
topology: tpu7x:2x2x1
jax: 0.10.0
libtpu: 0.0.40
codegen_flags: <defaults>
</compile_context>

<pallas_src>
import numpy as np
import jax
import jax.numpy as jnp
from jax import lax
from jax.experimental import pallas as pl
from jax.experimental.pallas import tpu as pltpu

_EPS = 1e-5


# ----------------------------------------------------------------------------
# Host-side constant builders (static per input shape).
# ----------------------------------------------------------------------------
def _gather_mats(batch, lin, lout, stride, k=3):
    """(k, batch*lin, batch*lout) block-diagonal 0/1 gather matrices.

    mats[t, b*lin + stride*i + t, b*lout + i] = 1
    so that  x (C, batch*lin) @ mats[t]  gathers tap t of every window for every
    batch element in one matmul.
    """
    mats = np.zeros((k, batch * lin, batch * lout), np.float32)
    idx = np.arange(lout)
    for t in range(k):
        for b in range(batch):
            mats[t, b * lin + stride * idx + t, b * lout + idx] = 1.0
    return jnp.asarray(mats)


def _avg_mat(batch, l):
    """(batch*l, batch) matrix: x @ mat averages each batch's lane block."""
    m = np.zeros((batch * l, batch), np.float32)
    for b in range(batch):
        m[b * l:(b + 1) * l, b] = 1.0 / float(l)
    return jnp.asarray(m)


# ----------------------------------------------------------------------------
# In-kernel helpers (trace-time only; operate on values + refs).
# ----------------------------------------------------------------------------
def _conv(x, sel_ref, w_ref, b_ref):
    """im2col conv: x (Cin, B*Lin) -> (Cout, B*Lout)."""
    k = sel_ref.shape[0]
    cin = w_ref.shape[1] // k
    wins = [jnp.dot(x, sel_ref[t], preferred_element_type=jnp.float32)
            for t in range(k)]                        # each (Cin, B*Lout)
    if cin == 1:
        # Contraction depth 3 is a poor MXU fit; do the tap sum on the VPU.
        w = w_ref[...]                                # (Cout, k)
        acc = w[:, 0:1] * wins[0]
        for t in range(1, k):
            acc = acc + w[:, t:t + 1] * wins[t]
        return acc + b_ref[...]
    xw = jnp.concatenate(wins, axis=0)                # (k*Cin, B*Lout)
    return jnp.dot(w_ref[...], xw, preferred_element_type=jnp.float32) + b_ref[...]


def _maxpool(x, sel_ref):
    """MaxPool1d via precomputed gather matrices + elementwise max."""
    k = sel_ref.shape[0]
    out = jnp.dot(x, sel_ref[0], preferred_element_type=jnp.float32)
    for t in range(1, k):
        out = jnp.maximum(
            out, jnp.dot(x, sel_ref[t], preferred_element_type=jnp.float32))
    return out


def _bn_relu(x, g_ref, be_ref):
    """Training-mode BatchNorm1d (stats over batch+length) + ReLU, whole tile."""
    inv_n = 1.0 / float(x.shape[1])                   # n = B * Lout
    mean = jnp.sum(x, axis=1, keepdims=True) * inv_n
    d = x - mean
    var = jnp.sum(d * d, axis=1, keepdims=True) * inv_n   # biased variance
    inv_std = lax.rsqrt(var + _EPS)
    scale = g_ref[...] * inv_std
    shift = be_ref[...] - mean * scale
    return jnp.maximum(x * scale + shift, 0.0)


# ----------------------------------------------------------------------------
# Kernel
# ----------------------------------------------------------------------------
def _net_kernel(x_ref, sc1_ref, sp1_ref, sc2_ref, sp2_ref, sc3_ref, avg_ref,
                w1_ref, b1_ref, g1_ref, be1_ref,
                w2_ref, b2_ref, g2_ref, be2_ref,
                w3_ref, b3_ref, g3_ref, be3_ref,
                fcw_ref, fcb_ref,
                out_ref):
    x = x_ref[...]                                    # (1, B*L)

    # stage 1: conv1(1->16, k3, s2) -> bn1 -> relu -> maxpool(3,2)
    h = _conv(x, sc1_ref, w1_ref, b1_ref)             # (16, B*L1)
    h = _bn_relu(h, g1_ref, be1_ref)
    h = _maxpool(h, sp1_ref)                          # (16, B*L2)

    # stage 2: conv2(16->32, k3, s1) -> bn2 -> relu -> maxpool(3,2)
    h = _conv(h, sc2_ref, w2_ref, b2_ref)             # (32, B*L3)
    h = _bn_relu(h, g2_ref, be2_ref)
    h = _maxpool(h, sp2_ref)                          # (32, B*L4)

    # stage 3: conv3(32->96, k3, s1) -> bn3 -> relu
    h = _conv(h, sc3_ref, w3_ref, b3_ref)             # (96, B*L5)
    h = _bn_relu(h, g3_ref, be3_ref)

    # adaptive avg pool -> flatten -> fc(96->1) -> sigmoid, all batched.
    pooled = jnp.dot(h, avg_ref[...], preferred_element_type=jnp.float32)   # (96, B)
    z = jnp.dot(fcw_ref[...], pooled, preferred_element_type=jnp.float32) + fcb_ref[...]  # (1, B)
    out_ref[...] = 1.0 / (1.0 + jnp.exp(-z))


# ----------------------------------------------------------------------------
# Wrapper
# ----------------------------------------------------------------------------
def net_gender_hr_forward(x, params):
    b, cin, l = x.shape
    assert cin == 1, "Net_gender_hr expects a single input channel"

    l1 = (l - 3) // 2 + 1       # conv1    k=3 s=2
    l2 = (l1 - 3) // 2 + 1      # maxpool1 k=3 s=2
    l3 = l2 - 2                 # conv2    k=3 s=1
    l4 = (l3 - 3) // 2 + 1      # maxpool2 k=3 s=2
    l5 = l4 - 2                 # conv3    k=3 s=1

    sel_c1 = _gather_mats(b, l, l1, 2)
    sel_p1 = _gather_mats(b, l1, l2, 2)
    sel_c2 = _gather_mats(b, l2, l3, 1)
    sel_p2 = _gather_mats(b, l3, l4, 2)
    sel_c3 = _gather_mats(b, l4, l5, 1)
    avg_mat = _avg_mat(b, l5)

    x2 = x.reshape(1, b * l)    # (1, B*L): batch-blocked lane layout

    operands = (x2, sel_c1, sel_p1, sel_c2, sel_p2, sel_c3, avg_mat,
                params["w1"], params["b1"], params["g1"], params["be1"],
                params["w2"], params["b2"], params["g2"], params["be2"],
                params["w3"], params["b3"], params["g3"], params["be3"],
                params["fcw"], params["fcb"])

    vmem = pl.BlockSpec(memory_space=pltpu.MemorySpace.VMEM)
    out = pl.pallas_call(
        _net_kernel,
        out_shape=jax.ShapeDtypeStruct((1, b), jnp.float32),
        in_specs=[vmem] * len(operands),
        out_specs=vmem,
    )(*operands)
    return out.reshape(b, 1)


# ----------------------------------------------------------------------------
# Parameter init (PyTorch-like layouts reshaped for the kernel)
# ----------------------------------------------------------------------------
def init_params(key):
    ks = jax.random.split(key, 8)

    def conv_w(k, cout, cin, ksz):
        fan_in = cin * ksz
        w = jax.random.normal(k, (cout, cin, ksz), jnp.float32) / jnp.sqrt(float(fan_in))
        # (Cout, Cin, K) -> (Cout, K*Cin); column index t*Cin + cin matches the
        # in-kernel im2col row order (tap-major, channel-minor).
        return jnp.transpose(w, (0, 2, 1)).reshape(cout, ksz * cin)

    w1 = conv_w(ks[0], 16, 1, 3)
    b1 = 0.1 * jax.random.normal(ks[1], (16, 1), jnp.float32)
    w2 = conv_w(ks[2], 32, 16, 3)
    b2 = 0.1 * jax.random.normal(ks[3], (32, 1), jnp.float32)
    w3 = conv_w(ks[4], 96, 32, 3)
    b3 = 0.1 * jax.random.normal(ks[5], (96, 1), jnp.float32)
    fcw = jax.random.normal(ks[6], (1, 96), jnp.float32) / jnp.sqrt(96.0)
    fcb = 0.1 * jax.random.normal(ks[7], (1, 1), jnp.float32)

    # BatchNorm affine params follow PyTorch init: gamma = 1, beta = 0.
    return {
        "w1": w1, "b1": b1,
        "g1": jnp.ones((16, 1), jnp.float32), "be1": jnp.zeros((16, 1), jnp.float32),
        "w2": w2, "b2": b2,
        "g2": jnp.ones((32, 1), jnp.float32), "be2": jnp.zeros((32, 1), jnp.float32),
        "w3": w3, "b3": b3,
        "g3": jnp.ones((96, 1), jnp.float32), "be3": jnp.zeros((96, 1), jnp.float32),
        "fcw": fcw, "fcb": fcb,
    }


if __name__ == "__main__":
    key = jax.random.PRNGKey(0)
    pkey, xkey = jax.random.split(key)
    params = init_params(pkey)

    # input: (batch=2, channels=1, length=128) -- NCL, same as PyTorch Conv1d input.
    x = jax.random.normal(xkey, (2, 1, 128), jnp.float32)

    out = net_gender_hr_forward(x, params)
    out = jax.block_until_ready(out)

    assert out.shape == (2, 1), out.shape
    assert bool(jnp.all(jnp.isfinite(out)))
    assert bool(jnp.all((out > 0.0) & (out < 1.0)))   # sigmoid output range
    print("KERNEL_OK")
</pallas_src>

<mosaic_0001>
module attributes {stable_mosaic.version = 11 : i64} {
  func.func @_net_kernel(%arg0: memref<1x256xf32, #tpu.memory_space<vmem>>, %arg1: memref<3x256x126xf32, #tpu.memory_space<vmem>>, %arg2: memref<3x126x62xf32, #tpu.memory_space<vmem>>, %arg3: memref<3x62x58xf32, #tpu.memory_space<vmem>>, %arg4: memref<3x58x28xf32, #tpu.memory_space<vmem>>, %arg5: memref<3x28x24xf32, #tpu.memory_space<vmem>>, %arg6: memref<24x2xf32, #tpu.memory_space<vmem>>, %arg7: memref<16x3xf32, #tpu.memory_space<vmem>>, %arg8: memref<16x1xf32, #tpu.memory_space<vmem>>, %arg9: memref<16x1xf32, #tpu.memory_space<vmem>>, %arg10: memref<16x1xf32, #tpu.memory_space<vmem>>, %arg11: memref<32x48xf32, #tpu.memory_space<vmem>>, %arg12: memref<32x1xf32, #tpu.memory_space<vmem>>, %arg13: memref<32x1xf32, #tpu.memory_space<vmem>>, %arg14: memref<32x1xf32, #tpu.memory_space<vmem>>, %arg15: memref<96x96xf32, #tpu.memory_space<vmem>>, %arg16: memref<96x1xf32, #tpu.memory_space<vmem>>, %arg17: memref<96x1xf32, #tpu.memory_space<vmem>>, %arg18: memref<96x1xf32, #tpu.memory_space<vmem>>, %arg19: memref<1x96xf32, #tpu.memory_space<vmem>>, %arg20: memref<1x1xf32, #tpu.memory_space<vmem>>, %arg21: memref<1x2xf32, #tpu.memory_space<vmem>>) attributes {dimension_semantics = [], scalar_prefetch = 0 : i64, scratch_operands = 0 : i64, tpu.core_type = #tpu.core_type<tc>} {
    %c0 = arith.constant 0 : index
    %c0_0 = arith.constant 0 : index
    %0 = vector.load %arg0[%c0, %c0_0] : memref<1x256xf32, #tpu.memory_space<vmem>>, vector<1x256xf32>
    %c0_1 = arith.constant 0 : index
    %c0_2 = arith.constant 0 : index
    %c0_3 = arith.constant 0 : index
    %1 = vector.load %arg1[%c0_1, %c0_2, %c0_3] : memref<3x256x126xf32, #tpu.memory_space<vmem>>, vector<1x256x126xf32>
    %2 = vector.shape_cast %1 : vector<1x256x126xf32> to vector<256x126xf32>
    %cst = arith.constant dense<0.000000e+00> : vector<1x126xf32>
    %3 = tpu.matmul %0, %2, %cst {dimension_numbers = #tpu.dot_dimension_numbers<[1], [0], [0], [1], [0, 0, 1, 1], [], []>} : vector<1x256xf32>, vector<256x126xf32>, vector<1x126xf32> -> vector<1x126xf32>
    %c1 = arith.constant 1 : index
    %c0_4 = arith.constant 0 : index
    %c0_5 = arith.constant 0 : index
    %4 = vector.load %arg1[%c1, %c0_4, %c0_5] : memref<3x256x126xf32, #tpu.memory_space<vmem>>, vector<1x256x126xf32>
    %5 = vector.shape_cast %4 : vector<1x256x126xf32> to vector<256x126xf32>
    %cst_6 = arith.constant dense<0.000000e+00> : vector<1x126xf32>
    %6 = tpu.matmul %0, %5, %cst_6 {dimension_numbers = #tpu.dot_dimension_numbers<[1], [0], [0], [1], [0, 0, 1, 1], [], []>} : vector<1x256xf32>, vector<256x126xf32>, vector<1x126xf32> -> vector<1x126xf32>
    %c2 = arith.constant 2 : index
    %c0_7 = arith.constant 0 : index
    %c0_8 = arith.constant 0 : index
    %7 = vector.load %arg1[%c2, %c0_7, %c0_8] : memref<3x256x126xf32, #tpu.memory_space<vmem>>, vector<1x256x126xf32>
    %8 = vector.shape_cast %7 : vector<1x256x126xf32> to vector<256x126xf32>
    %cst_9 = arith.constant dense<0.000000e+00> : vector<1x126xf32>
    %9 = tpu.matmul %0, %8, %cst_9 {dimension_numbers = #tpu.dot_dimension_numbers<[1], [0], [0], [1], [0, 0, 1, 1], [], []>} : vector<1x256xf32>, vector<256x126xf32>, vector<1x126xf32> -> vector<1x126xf32>
    %c0_10 = arith.constant 0 : index
    %c0_11 = arith.constant 0 : index
    %10 = vector.load %arg7[%c0_10, %c0_11] : memref<16x3xf32, #tpu.memory_space<vmem>>, vector<16x3xf32>
    %11 = vector.extract_strided_slice %10 {offsets = [0, 0], sizes = [16, 1], strides = [1, 1]} : vector<16x3xf32> to vector<16x1xf32>
    %12 = vector.broadcast %11 : vector<16x1xf32> to vector<16x126xf32>
    %13 = vector.broadcast %3 : vector<1x126xf32> to vector<16x126xf32>
    %14 = arith.mulf %12, %13 : vector<16x126xf32>
    %15 = vector.extract_strided_slice %10 {offsets = [0, 1], sizes = [16, 1], strides = [1, 1]} : vector<16x3xf32> to vector<16x1xf32>
    %16 = vector.broadcast %15 : vector<16x1xf32> to vector<16x126xf32>
    %17 = vector.broadcast %6 : vector<1x126xf32> to vector<16x126xf32>
    %18 = arith.mulf %16, %17 : vector<16x126xf32>
    %19 = arith.addf %14, %18 : vector<16x126xf32>
    %20 = vector.extract_strided_slice %10 {offsets = [0, 2], sizes = [16, 1], strides = [1, 1]} : vector<16x3xf32> to vector<16x1xf32>
    %21 = vector.broadcast %20 : vector<16x1xf32> to vector<16x126xf32>
    %22 = vector.broadcast %9 : vector<1x126xf32> to vector<16x126xf32>
    %23 = arith.mulf %21, %22 : vector<16x126xf32>
    %24 = arith.addf %19, %23 : vector<16x126xf32>
    %c0_12 = arith.constant 0 : index
    %c0_13 = arith.constant 0 : index
    %25 = vector.load %arg8[%c0_12, %c0_13] : memref<16x1xf32, #tpu.memory_space<vmem>>, vector<16x1xf32>
    %26 = vector.broadcast %25 : vector<16x1xf32> to vector<16x126xf32>
    %27 = arith.addf %24, %26 : vector<16x126xf32>
    %cst_14 = arith.constant dense<0.000000e+00> : vector<16xf32>
    %28 = vector.multi_reduction <add>, %27, %cst_14 [1] : vector<16x126xf32> to vector<16xf32>
    %29 = vector.shape_cast %28 : vector<16xf32> to vector<16x1xf32>
    %cst_15 = arith.constant 0.00793650839 : f32
    %30 = vector.broadcast %cst_15 : f32 to vector<16x1xf32>
    %31 = arith.mulf %29, %30 : vector<16x1xf32>
    %32 = vector.broadcast %31 : vector<16x1xf32> to vector<16x126xf32>
    %33 = arith.subf %27, %32 : vector<16x126xf32>
    %34 = arith.mulf %33, %33 : vector<16x126xf32>
    %cst_16 = arith.constant dense<0.000000e+00> : vector<16xf32>
    %35 = vector.multi_reduction <add>, %34, %cst_16 [1] : vector<16x126xf32> to vector<16xf32>
    %36 = vector.shape_cast %35 : vector<16xf32> to vector<16x1xf32>
    %cst_17 = arith.constant 0.00793650839 : f32
    %37 = vector.broadcast %cst_17 : f32 to vector<16x1xf32>
    %38 = arith.mulf %36, %37 : vector<16x1xf32>
    %cst_18 = arith.constant 9.99999974E-6 : f32
    %39 = vector.broadcast %cst_18 : f32 to vector<16x1xf32>
    %40 = arith.addf %38, %39 : vector<16x1xf32>
    %41 = math.rsqrt %40 : vector<16x1xf32>
    %c0_19 = arith.constant 0 : index
    %c0_20 = arith.constant 0 : index
    %42 = vector.load %arg9[%c0_19, %c0_20] : memref<16x1xf32, #tpu.memory_space<vmem>>, vector<16x1xf32>
    %43 = arith.mulf %42, %41 : vector<16x1xf32>
    %c0_21 = arith.constant 0 : index
    %c0_22 = arith.constant 0 : index
    %44 = vector.load %arg10[%c0_21, %c0_22] : memref<16x1xf32, #tpu.memory_space<vmem>>, vector<16x1xf32>
    %45 = arith.mulf %31, %43 : vector<16x1xf32>
    %46 = arith.subf %44, %45 : vector<16x1xf32>
    %47 = vector.broadcast %43 : vector<16x1xf32> to vector<16x126xf32>
    %48 = arith.mulf %27, %47 : vector<16x126xf32>
    %49 = vector.broadcast %46 : vector<16x1xf32> to vector<16x126xf32>
    %50 = arith.addf %48, %49 : vector<16x126xf32>
    %cst_23 = arith.constant 0.000000e+00 : f32
    %51 = vector.broadcast %cst_23 : f32 to vector<16x126xf32>
    %52 = arith.maximumf %50, %51 : vector<16x126xf32>
    %c0_24 = arith.constant 0 : index
    %c0_25 = arith.constant 0 : index
    %c0_26 = arith.constant 0 : index
    %53 = vector.load %arg2[%c0_24, %c0_25, %c0_26] : memref<3x126x62xf32, #tpu.memory_space<vmem>>, vector<1x126x62xf32>
    %54 = vector.shape_cast %53 : vector<1x126x62xf32> to vector<126x62xf32>
    %cst_27 = arith.constant dense<0.000000e+00> : vector<16x62xf32>
    %55 = tpu.matmul %52, %54, %cst_27 {dimension_numbers = #tpu.dot_dimension_numbers<[1], [0], [0], [1], [0, 0, 1, 1], [], []>} : vector<16x126xf32>, vector<126x62xf32>, vector<16x62xf32> -> vector<16x62xf32>
    %c1_28 = arith.constant 1 : index
    %c0_29 = arith.constant 0 : index
    %c0_30 = arith.constant 0 : index
    %56 = vector.load %arg2[%c1_28, %c0_29, %c0_30] : memref<3x126x62xf32, #tpu.memory_space<vmem>>, vector<1x126x62xf32>
    %57 = vector.shape_cast %56 : vector<1x126x62xf32> to vector<126x62xf32>
    %cst_31 = arith.constant dense<0.000000e+00> : vector<16x62xf32>
    %58 = tpu.matmul %52, %57, %cst_31 {dimension_numbers = #tpu.dot_dimension_numbers<[1], [0], [0], [1], [0, 0, 1, 1], [], []>} : vector<16x126xf32>, vector<126x62xf32>, vector<16x62xf32> -> vector<16x62xf32>
    %59 = arith.maximumf %55, %58 : vector<16x62xf32>
    %c2_32 = arith.constant 2 : index
    %c0_33 = arith.constant 0 : index
    %c0_34 = arith.constant 0 : index
    %60 = vector.load %arg2[%c2_32, %c0_33, %c0_34] : memref<3x126x62xf32, #tpu.memory_space<vmem>>, vector<1x126x62xf32>
    %61 = vector.shape_cast %60 : vector<1x126x62xf32> to vector<126x62xf32>
    %cst_35 = arith.constant dense<0.000000e+00> : vector<16x62xf32>
    %62 = tpu.matmul %52, %61, %cst_35 {dimension_numbers = #tpu.dot_dimension_numbers<[1], [0], [0], [1], [0, 0, 1, 1], [], []>} : vector<16x126xf32>, vector<126x62xf32>, vector<16x62xf32> -> vector<16x62xf32>
    %63 = arith.maximumf %59, %62 : vector<16x62xf32>
    %c0_36 = arith.constant 0 : index
    %c0_37 = arith.constant 0 : index
    %c0_38 = arith.constant 0 : index
    %64 = vector.load %arg3[%c0_36, %c0_37, %c0_38] : memref<3x62x58xf32, #tpu.memory_space<vmem>>, vector<1x62x58xf32>
    %65 = vector.shape_cast %64 : vector<1x62x58xf32> to vector<62x58xf32>
    %cst_39 = arith.constant dense<0.000000e+00> : vector<16x58xf32>
    %66 = tpu.matmul %63, %65, %cst_39 {dimension_numbers = #tpu.dot_dimension_numbers<[1], [0], [0], [1], [0, 0, 1, 1], [], []>} : vector<16x62xf32>, vector<62x58xf32>, vector<16x58xf32> -> vector<16x58xf32>
    %c1_40 = arith.constant 1 : index
    %c0_41 = arith.constant 0 : index
    %c0_42 = arith.constant 0 : index
    %67 = vector.load %arg3[%c1_40, %c0_41, %c0_42] : memref<3x62x58xf32, #tpu.memory_space<vmem>>, vector<1x62x58xf32>
    %68 = vector.shape_cast %67 : vector<1x62x58xf32> to vector<62x58xf32>
    %cst_43 = arith.constant dense<0.000000e+00> : vector<16x58xf32>
    %69 = tpu.matmul %63, %68, %cst_43 {dimension_numbers = #tpu.dot_dimension_numbers<[1], [0], [0], [1], [0, 0, 1, 1], [], []>} : vector<16x62xf32>, vector<62x58xf32>, vector<16x58xf32> -> vector<16x58xf32>
    %c2_44 = arith.constant 2 : index
    %c0_45 = arith.constant 0 : index
    %c0_46 = arith.constant 0 : index
    %70 = vector.load %arg3[%c2_44, %c0_45, %c0_46] : memref<3x62x58xf32, #tpu.memory_space<vmem>>, vector<1x62x58xf32>
    %71 = vector.shape_cast %70 : vector<1x62x58xf32> to vector<62x58xf32>
    %cst_47 = arith.constant dense<0.000000e+00> : vector<16x58xf32>
    %72 = tpu.matmul %63, %71, %cst_47 {dimension_numbers = #tpu.dot_dimension_numbers<[1], [0], [0], [1], [0, 0, 1, 1], [], []>} : vector<16x62xf32>, vector<62x58xf32>, vector<16x58xf32> -> vector<16x58xf32>
    %73 = tpu.concatenate %66, %69, %72 in 0 : vector<16x58xf32>, vector<16x58xf32>, vector<16x58xf32> -> vector<48x58xf32>
    %c0_48 = arith.constant 0 : index
    %c0_49 = arith.constant 0 : index
    %74 = vector.load %arg11[%c0_48, %c0_49] : memref<32x48xf32, #tpu.memory_space<vmem>>, vector<32x48xf32>
    %cst_50 = arith.constant dense<0.000000e+00> : vector<32x58xf32>
    %75 = tpu.matmul %74, %73, %cst_50 {dimension_numbers = #tpu.dot_dimension_numbers<[1], [0], [0], [1], [0, 0, 1, 1], [], []>} : vector<32x48xf32>, vector<48x58xf32>, vector<32x58xf32> -> vector<32x58xf32>
    %c0_51 = arith.constant 0 : index
    %c0_52 = arith.constant 0 : index
    %76 = vector.load %arg12[%c0_51, %c0_52] : memref<32x1xf32, #tpu.memory_space<vmem>>, vector<32x1xf32>
    %77 = vector.broadcast %76 : vector<32x1xf32> to vector<32x58xf32>
    %78 = arith.addf %75, %77 : vector<32x58xf32>
    %cst_53 = arith.constant dense<0.000000e+00> : vector<32xf32>
    %79 = vector.multi_reduction <add>, %78, %cst_53 [1] : vector<32x58xf32> to vector<32xf32>
    %80 = vector.shape_cast %79 : vector<32xf32> to vector<32x1xf32>
    %cst_54 = arith.constant 0.0172413792 : f32
    %81 = vector.broadcast %cst_54 : f32 to vector<32x1xf32>
    %82 = arith.mulf %80, %81 : vector<32x1xf32>
    %83 = vector.broadcast %82 : vector<32x1xf32> to vector<32x58xf32>
    %84 = arith.subf %78, %83 : vector<32x58xf32>
    %85 = arith.mulf %84, %84 : vector<32x58xf32>
    %cst_55 = arith.constant dense<0.000000e+00> : vector<32xf32>
    %86 = vector.multi_reduction <add>, %85, %cst_55 [1] : vector<32x58xf32> to vector<32xf32>
    %87 = vector.shape_cast %86 : vector<32xf32> to vector<32x1xf32>
    %cst_56 = arith.constant 0.0172413792 : f32
    %88 = vector.broadcast %cst_56 : f32 to vector<32x1xf32>
    %89 = arith.mulf %87, %88 : vector<32x1xf32>
    %cst_57 = arith.constant 9.99999974E-6 : f32
    %90 = vector.broadcast %cst_57 : f32 to vector<32x1xf32>
    %91 = arith.addf %89, %90 : vector<32x1xf32>
    %92 = math.rsqrt %91 : vector<32x1xf32>
    %c0_58 = arith.constant 0 : index
    %c0_59 = arith.constant 0 : index
    %93 = vector.load %arg13[%c0_58, %c0_59] : memref<32x1xf32, #tpu.memory_space<vmem>>, vector<32x1xf32>
    %94 = arith.mulf %93, %92 : vector<32x1xf32>
    %c0_60 = arith.constant 0 : index
    %c0_61 = arith.constant 0 : index
    %95 = vector.load %arg14[%c0_60, %c0_61] : memref<32x1xf32, #tpu.memory_space<vmem>>, vector<32x1xf32>
    %96 = arith.mulf %82, %94 : vector<32x1xf32>
    %97 = arith.subf %95, %96 : vector<32x1xf32>
    %98 = vector.broadcast %94 : vector<32x1xf32> to vector<32x58xf32>
    %99 = arith.mulf %78, %98 : vector<32x58xf32>
    %100 = vector.broadcast %97 : vector<32x1xf32> to vector<32x58xf32>
    %101 = arith.addf %99, %100 : vector<32x58xf32>
    %cst_62 = arith.constant 0.000000e+00 : f32
    %102 = vector.broadcast %cst_62 : f32 to vector<32x58xf32>
    %103 = arith.maximumf %101, %102 : vector<32x58xf32>
    %c0_63 = arith.constant 0 : index
    %c0_64 = arith.constant 0 : index
    %c0_65 = arith.constant 0 : index
    %104 = vector.load %arg4[%c0_63, %c0_64, %c0_65] : memref<3x58x28xf32, #tpu.memory_space<vmem>>, vector<1x58x28xf32>
    %105 = vector.shape_cast %104 : vector<1x58x28xf32> to vector<58x28xf32>
    %cst_66 = arith.constant dense<0.000000e+00> : vector<32x28xf32>
    %106 = tpu.matmul %103, %105, %cst_66 {dimension_numbers = #tpu.dot_dimension_numbers<[1], [0], [0], [1], [0, 0, 1, 1], [], []>} : vector<32x58xf32>, vector<58x28xf32>, vector<32x28xf32> -> vector<32x28xf32>
    %c1_67 = arith.constant 1 : index
    %c0_68 = arith.constant 0 : index
    %c0_69 = arith.constant 0 : index
    %107 = vector.load %arg4[%c1_67, %c0_68, %c0_69] : memref<3x58x28xf32, #tpu.memory_space<vmem>>, vector<1x58x28xf32>
    %108 = vector.shape_cast %107 : vector<1x58x28xf32> to vector<58x28xf32>
    %cst_70 = arith.constant dense<0.000000e+00> : vector<32x28xf32>
    %109 = tpu.matmul %103, %108, %cst_70 {dimension_numbers = #tpu.dot_dimension_numbers<[1], [0], [0], [1], [0, 0, 1, 1], [], []>} : vector<32x58xf32>, vector<58x28xf32>, vector<32x28xf32> -> vector<32x28xf32>
    %110 = arith.maximumf %106, %109 : vector<32x28xf32>
    %c2_71 = arith.constant 2 : index
    %c0_72 = arith.constant 0 : index
    %c0_73 = arith.constant 0 : index
    %111 = vector.load %arg4[%c2_71, %c0_72, %c0_73] : memref<3x58x28xf32, #tpu.memory_space<vmem>>, vector<1x58x28xf32>
    %112 = vector.shape_cast %111 : vector<1x58x28xf32> to vector<58x28xf32>
    %cst_74 = arith.constant dense<0.000000e+00> : vector<32x28xf32>
    %113 = tpu.matmul %103, %112, %cst_74 {dimension_numbers = #tpu.dot_dimension_numbers<[1], [0], [0], [1], [0, 0, 1, 1], [], []>} : vector<32x58xf32>, vector<58x28xf32>, vector<32x28xf32> -> vector<32x28xf32>
    %114 = arith.maximumf %110, %113 : vector<32x28xf32>
    %c0_75 = arith.constant 0 : index
    %c0_76 = arith.constant 0 : index
    %c0_77 = arith.constant 0 : index
    %115 = vector.load %arg5[%c0_75, %c0_76, %c0_77] : memref<3x28x24xf32, #tpu.memory_space<vmem>>, vector<1x28x24xf32>
    %116 = vector.shape_cast %115 : vector<1x28x24xf32> to vector<28x24xf32>
    %cst_78 = arith.constant dense<0.000000e+00> : vector<32x24xf32>
    %117 = tpu.matmul %114, %116, %cst_78 {dimension_numbers = #tpu.dot_dimension_numbers<[1], [0], [0], [1], [0, 0, 1, 1], [], []>} : vector<32x28xf32>, vector<28x24xf32>, vector<32x24xf32> -> vector<32x24xf32>
    %c1_79 = arith.constant 1 : index
    %c0_80 = arith.constant 0 : index
    %c0_81 = arith.constant 0 : index
    %118 = vector.load %arg5[%c1_79, %c0_80, %c0_81] : memref<3x28x24xf32, #tpu.memory_space<vmem>>, vector<1x28x24xf32>
    %119 = vector.shape_cast %118 : vector<1x28x24xf32> to vector<28x24xf32>
    %cst_82 = arith.constant dense<0.000000e+00> : vector<32x24xf32>
    %120 = tpu.matmul %114, %119, %cst_82 {dimension_numbers = #tpu.dot_dimension_numbers<[1], [0], [0], [1], [0, 0, 1, 1], [], []>} : vector<32x28xf32>, vector<28x24xf32>, vector<32x24xf32> -> vector<32x24xf32>
    %c2_83 = arith.constant 2 : index
    %c0_84 = arith.constant 0 : index
    %c0_85 = arith.constant 0 : index
    %121 = vector.load %arg5[%c2_83, %c0_84, %c0_85] : memref<3x28x24xf32, #tpu.memory_space<vmem>>, vector<1x28x24xf32>
    %122 = vector.shape_cast %121 : vector<1x28x24xf32> to vector<28x24xf32>
    %cst_86 = arith.constant dense<0.000000e+00> : vector<32x24xf32>
    %123 = tpu.matmul %114, %122, %cst_86 {dimension_numbers = #tpu.dot_dimension_numbers<[1], [0], [0], [1], [0, 0, 1, 1], [], []>} : vector<32x28xf32>, vector<28x24xf32>, vector<32x24xf32> -> vector<32x24xf32>
    %124 = tpu.concatenate %117, %120, %123 in 0 : vector<32x24xf32>, vector<32x24xf32>, vector<32x24xf32> -> vector<96x24xf32>
    %c0_87 = arith.constant 0 : index
    %c0_88 = arith.constant 0 : index
    %125 = vector.load %arg15[%c0_87, %c0_88] : memref<96x96xf32, #tpu.memory_space<vmem>>, vector<96x96xf32>
    %cst_89 = arith.constant dense<0.000000e+00> : vector<96x24xf32>
    %126 = tpu.matmul %125, %124, %cst_89 {dimension_numbers = #tpu.dot_dimension_numbers<[1], [0], [0], [1], [0, 0, 1, 1], [], []>} : vector<96x96xf32>, vector<96x24xf32>, vector<96x24xf32> -> vector<96x24xf32>
    %c0_90 = arith.constant 0 : index
    %c0_91 = arith.constant 0 : index
    %127 = vector.load %arg16[%c0_90, %c0_91] : memref<96x1xf32, #tpu.memory_space<vmem>>, vector<96x1xf32>
    %128 = vector.broadcast %127 : vector<96x1xf32> to vector<96x24xf32>
    %129 = arith.addf %126, %128 : vector<96x24xf32>
    %cst_92 = arith.constant dense<0.000000e+00> : vector<96xf32>
    %130 = vector.multi_reduction <add>, %129, %cst_92 [1] : vector<96x24xf32> to vector<96xf32>
    %131 = vector.shape_cast %130 : vector<96xf32> to vector<96x1xf32>
    %cst_93 = arith.constant 0.0416666679 : f32
    %132 = vector.broadcast %cst_93 : f32 to vector<96x1xf32>
    %133 = arith.mulf %131, %132 : vector<96x1xf32>
    %134 = vector.broadcast %133 : vector<96x1xf32> to vector<96x24xf32>
    %135 = arith.subf %129, %134 : vector<96x24xf32>
    %136 = arith.mulf %135, %135 : vector<96x24xf32>
    %cst_94 = arith.constant dense<0.000000e+00> : vector<96xf32>
    %137 = vector.multi_reduction <add>, %136, %cst_94 [1] : vector<96x24xf32> to vector<96xf32>
    %138 = vector.shape_cast %137 : vector<96xf32> to vector<96x1xf32>
    %cst_95 = arith.constant 0.0416666679 : f32
    %139 = vector.broadcast %cst_95 : f32 to vector<96x1xf32>
    %140 = arith.mulf %138, %139 : vector<96x1xf32>
    %cst_96 = arith.constant 9.99999974E-6 : f32
    %141 = vector.broadcast %cst_96 : f32 to vector<96x1xf32>
    %142 = arith.addf %140, %141 : vector<96x1xf32>
    %143 = math.rsqrt %142 : vector<96x1xf32>
    %c0_97 = arith.constant 0 : index
    %c0_98 = arith.constant 0 : index
    %144 = vector.load %arg17[%c0_97, %c0_98] : memref<96x1xf32, #tpu.memory_space<vmem>>, vector<96x1xf32>
    %145 = arith.mulf %144, %143 : vector<96x1xf32>
    %c0_99 = arith.constant 0 : index
    %c0_100 = arith.constant 0 : index
    %146 = vector.load %arg18[%c0_99, %c0_100] : memref<96x1xf32, #tpu.memory_space<vmem>>, vector<96x1xf32>
    %147 = arith.mulf %133, %145 : vector<96x1xf32>
    %148 = arith.subf %146, %147 : vector<96x1xf32>
    %149 = vector.broadcast %145 : vector<96x1xf32> to vector<96x24xf32>
    %150 = arith.mulf %129, %149 : vector<96x24xf32>
    %151 = vector.broadcast %148 : vector<96x1xf32> to vector<96x24xf32>
    %152 = arith.addf %150, %151 : vector<96x24xf32>
    %cst_101 = arith.constant 0.000000e+00 : f32
    %153 = vector.broadcast %cst_101 : f32 to vector<96x24xf32>
    %154 = arith.maximumf %152, %153 : vector<96x24xf32>
    %c0_102 = arith.constant 0 : index
    %c0_103 = arith.constant 0 : index
    %155 = vector.load %arg6[%c0_102, %c0_103] : memref<24x2xf32, #tpu.memory_space<vmem>>, vector<24x2xf32>
    %cst_104 = arith.constant dense<0.000000e+00> : vector<96x2xf32>
    %156 = tpu.matmul %154, %155, %cst_104 {dimension_numbers = #tpu.dot_dimension_numbers<[1], [0], [0], [1], [0, 0, 1, 1], [], []>} : vector<96x24xf32>, vector<24x2xf32>, vector<96x2xf32> -> vector<96x2xf32>
    %c0_105 = arith.constant 0 : index
    %c0_106 = arith.constant 0 : index
    %157 = vector.load %arg19[%c0_105, %c0_106] : memref<1x96xf32, #tpu.memory_space<vmem>>, vector<1x96xf32>
    %cst_107 = arith.constant dense<0.000000e+00> : vector<1x2xf32>
    %158 = tpu.matmul %157, %156, %cst_107 {dimension_numbers = #tpu.dot_dimension_numbers<[1], [0], [0], [1], [0, 0, 1, 1], [], []>} : vector<1x96xf32>, vector<96x2xf32>, vector<1x2xf32> -> vector<1x2xf32>
    %c0_108 = arith.constant 0 : index
    %c0_109 = arith.constant 0 : index
    %159 = vector.load %arg20[%c0_108, %c0_109] : memref<1x1xf32, #tpu.memory_space<vmem>>, vector<1x1xf32>
    %160 = vector.broadcast %159 : vector<1x1xf32> to vector<1x2xf32>
    %161 = arith.addf %158, %160 : vector<1x2xf32>
    %cst_110 = arith.constant 0.000000e+00 : f32
    %162 = vector.broadcast %cst_110 : f32 to vector<1x2xf32>
    %163 = arith.subf %162, %161 : vector<1x2xf32>
    %164 = math.exp %163 : vector<1x2xf32>
    %cst_111 = arith.constant 1.000000e+00 : f32
    %165 = vector.broadcast %cst_111 : f32 to vector<1x2xf32>
    %166 = arith.addf %165, %164 : vector<1x2xf32>
    %cst_112 = arith.constant 1.000000e+00 : f32
    %167 = vector.broadcast %cst_112 : f32 to vector<1x2xf32>
    %168 = arith.divf %167, %166 : vector<1x2xf32>
    %c0_113 = arith.constant 0 : index
    %c0_114 = arith.constant 0 : index
    %169 = vector.load %arg21[%c0_113, %c0_114] : memref<1x2xf32, #tpu.memory_space<vmem>>, vector<1x2xf32>
    tpu.vector_store %arg21[%c0_113, %c0_114], %168 {strides = array<i32>} : memref<1x2xf32, #tpu.memory_space<vmem>>, vector<1x2xf32>,
    return
  }
}

</mosaic_0001>

<bundles_post_ra>
// kernel: tpu_custom_call.1
= control target key start
LH: loop header
LB: loop body
LE: loop exit
PB: predicated region body
PF: predicated region fallthrough
CT: control target
= control target key end

     0   :  { %s5502_s0 = inlined_call_operand.vmem [shape: f32[1,256], index: 0, kind: input, shape index: {}]   ;;  %s5503_s1 = inlined_call_operand.vmem [shape: f32[3,256,126], index: 1, kind: input, shape index: {}]   ;;  %s5504_s2 = inlined_call_operand.vmem [shape: f32[3,126,62], index: 2, kind: input, shape index: {}]   ;;  %s5505_s3 = inlined_call_operand.vmem [shape: f32[3,62,58], index: 3, kind: input, shape index: {}]   ;;  %s5506_s4 = inlined_call_operand.vmem [shape: f32[3,58,28], index: 4, kind: input, shape index: {}]   ;;  %s5507_s5 = inlined_call_operand.vmem [shape: f32[3,28,24], index: 5, kind: input, shape index: {}]   ;;  %s5508_s6 = inlined_call_operand.vmem [shape: f32[24,2], index: 6, kind: input, shape index: {}]   ;;  %s5509_s7 = inlined_call_operand.vmem [shape: f32[16,3], index: 7, kind: input, shape index: {}]   ;;  %s5510_s8 = inlined_call_operand.vmem [shape: f32[16,1], index: 8, kind: input, shape index: {}]   ;;  %s5511_s9 = inlined_call_operand.vmem [shape: f32[16,1], index: 9, kind: input, shape index: {}]   ;;  %s5512_s10 = inlined_call_operand.vmem [shape: f32[16,1], index: 10, kind: input, shape index: {}]   ;;  %s5513_s11 = inlined_call_operand.vmem [shape: f32[32,48], index: 11, kind: input, shape index: {}]   ;;  %s5514_s12 = inlined_call_operand.vmem [shape: f32[32,1], index: 12, kind: input, shape index: {}]   ;;  %s5515_s13 = inlined_call_operand.vmem [shape: f32[32,1], index: 13, kind: input, shape index: {}]   ;;  %s5516_s14 = inlined_call_operand.vmem [shape: f32[32,1], index: 14, kind: input, shape index: {}]   ;;  %s5517_s15 = inlined_call_operand.vmem [shape: f32[96,96], index: 15, kind: input, shape index: {}]   ;;  %s5518_s16 = inlined_call_operand.vmem [shape: f32[96,1], index: 16, kind: input, shape index: {}]   ;;  %s5519_s17 = inlined_call_operand.vmem [shape: f32[96,1], index: 17, kind: input, shape index: {}]   ;;  %s5520_s18 = inlined_call_operand.vmem [shape: f32[96,1], index: 18, kind: input, shape index: {}]   ;;  %s5521_s19 = inlined_call_operand.vmem [shape: f32[1,96], index: 19, kind: input, shape index: {}]   ;;  %s5522_s20 = inlined_call_operand.<no memory space> [shape: f32[1,1], index: 20, kind: input, shape index: {}]   ;;  %s5523_s21 = inlined_call_operand.hbm [shape: f32[1,2], index: 21, kind: output, shape index: {}]  }
   0x1   :  { %5529 = sst [smem:[#allocation6_spill]] %s5502_s0  ;;  %v26_v0 = vstv %s5522_s20 }
   0x2   :  { %5530 = sst [smem:[#allocation7_spill]] %s5503_s1  ;;  %27 = vst [vmem:[#allocation2] sm:$0x1] %v26_v0 }
   0x3   :  { %5531 = sst [smem:[#allocation8_spill]] %s5504_s2 }
   0x4   :  { %5532 = sst [smem:[#allocation9_spill]] %s5505_s3 }
   0x5   :  { %5533 = sst [smem:[#allocation10_spill]] %s5506_s4 }
   0x6   :  { %5534 = sst [smem:[#allocation11_spill]] %s5507_s5 }
   0x7   :  { %s5535_s3 = sld [smem:[#allocation7_spill]]  ;;  %v4184_v8 = vmov 0   ;;  %v105_v49 = vlaneseq  ;;  %s5536_s5 = sld [smem:[#allocation6_spill]] }
   0x8   :  { %4114 = vset.pattern.permute.xlu1 %v4184_v8  ;;  %4112 = vset.pattern.permute.xlu0 %v4184_v8 }
   0x9   :  { %v106_v63 = vshrl.u32 %v105_v49, 7 }
   0xd   :  { %v88_v1 = vld [vmem:[%s5535_s3 + $0x80] sm:$0xff]  ;;  %v89_v2 = vld [vmem:[%s5535_s3 + $0x88] sm:$0xff]  ;;  %v90_v13 = vld [vmem:[%s5535_s3 + $0x90] sm:$0xff] }
   0xe   :  { %v2821_v3 = vld [vmem:[%s5535_s3 + $0x180] sm:$0xff]  ;;  %v3710_v4 = vpack.c.bf16 %v89_v2, %v88_v1  ;;  %v2822_v5 = vld [vmem:[%s5535_s3 + $0x188] sm:$0xff]  ;;  %v91_v15 = vld [vmem:[%s5535_s3 + $0x98] sm:$0xff] }
   0xf   :  { %v72_v6 = vld [vmem:[%s5535_s3] sm:$0xff]  ;;  %v73_v7 = vld [vmem:[%s5535_s3 + $0x8] sm:$0xff]  ;;  %v3742_v9 = vpack.c.bf16 %v2822_v5, %v2821_v3  ;;  %v2823_v16 = vld [vmem:[%s5535_s3 + $0x190] sm:$0xff]  ;;  %v3714_v18 = vpack.c.bf16 %v91_v15, %v90_v13  ;;  %v111_v13 = vsub.s32 1, %v106_v63 }
  0x10   :  { %v3712_v10 = vpack.c.bf16 %v73_v7, %v72_v6  ;;  %v2805_v11 = vld [vmem:[%s5535_s3 + $0x100] sm:$0xff]  ;;  %v2806_v12 = vld [vmem:[%s5535_s3 + $0x108] sm:$0xff]  ;;  %3711 = vmatprep.subr.bf16.mxu0 %v3710_v4  ;;  %v2824_v17 = vld [vmem:[%s5535_s3 + $0x198] sm:$0xff] }
  0x11   :  { %v3744_v14 = vpack.c.bf16 %v2806_v12, %v2805_v11  ;;  %3743 = vmatprep.subr.bf16.mxu1 %v3742_v9  ;;  %v3746_v19 = vpack.c.bf16 %v2824_v17, %v2823_v16  ;;  %v74_v20 = vld [vmem:[%s5535_s3 + $0x10] sm:$0xff]  ;;  %v75_v21 = vld [vmem:[%s5535_s3 + $0x18] sm:$0xff]  ;;  %v92_v25 = vld [vmem:[%s5535_s3 + $0xa0] sm:$0xff] }
  0x12   :  { %3713 = vmatpush3.bf16.msra.mxu0 %v3712_v10  ;;  %v2807_v22 = vld [vmem:[%s5535_s3 + $0x110] sm:$0xff]  ;;  %v3716_v23 = vpack.c.bf16 %v75_v21, %v74_v20  ;;  %v2808_v24 = vld [vmem:[%s5535_s3 + $0x118] sm:$0xff]  ;;  %v93_v26 = vld [vmem:[%s5535_s3 + $0xa8] sm:$0xff] }
  0x13   :  { %3745 = vmatpush3.bf16.msra.mxu1 %v3744_v14  ;;  %3715 = vmatprep.subr.bf16.mxu0 %v3714_v18  ;;  %v3748_v27 = vpack.c.bf16 %v2808_v24, %v2807_v22  ;;  %v3718_v28 = vpack.c.bf16 %v93_v26, %v92_v25  ;;  %v2825_v29 = vld [vmem:[%s5535_s3 + $0x1a0] sm:$0xff]  ;;  %v2826_v30 = vld [vmem:[%s5535_s3 + $0x1a8] sm:$0xff]  ;;  %v94_v37 = vld [vmem:[%s5535_s3 + $0xb0] sm:$0xff] }
  0x14   :  { %3747 = vmatprep.subr.bf16.mxu1 %v3746_v19  ;;  %v76_v31 = vld [vmem:[%s5535_s3 + $0x20] sm:$0xff]  ;;  %v3750_v32 = vpack.c.bf16 %v2826_v30, %v2825_v29  ;;  %v77_v33 = vld [vmem:[%s5535_s3 + $0x28] sm:$0xff]  ;;  %v95_v38 = vld [vmem:[%s5535_s3 + $0xb8] sm:$0xff] }
  0x15   :  { %v2809_v34 = vld [vmem:[%s5535_s3 + $0x120] sm:$0xff]  ;;  %v2810_v35 = vld [vmem:[%s5535_s3 + $0x128] sm:$0xff]  ;;  %v3720_v36 = vpack.c.bf16 %v77_v33, %v76_v31  ;;  %v2827_v39 = vld [vmem:[%s5535_s3 + $0x1b0] sm:$0xff]  ;;  %v3722_v41 = vpack.c.bf16 %v95_v38, %v94_v37 }
  0x16   :  { %3717 = vmatpush3.bf16.msra.mxu0 %v3716_v23  ;;  %v3752_v40 = vpack.c.bf16 %v2810_v35, %v2809_v34  ;;  %v2828_v42 = vld [vmem:[%s5535_s3 + $0x1b8] sm:$0xff]  ;;  %v78_v43 = vld [vmem:[%s5535_s3 + $0x30] sm:$0xff]  ;;  %v96_v48 = vld [vmem:[%s5535_s3 + $0xc0] sm:$0xff] }
  0x17   :  { %3749 = vmatpush3.bf16.msra.mxu1 %v3748_v27  ;;  %3719 = vmatprep.subr.bf16.mxu0 %v3718_v28  ;;  %v79_v44 = vld [vmem:[%s5535_s3 + $0x38] sm:$0xff]  ;;  %v3754_v45 = vpack.c.bf16 %v2828_v42, %v2827_v39  ;;  %v2811_v46 = vld [vmem:[%s5535_s3 + $0x130] sm:$0xff]  ;;  %v97_v50 = vld [vmem:[%s5535_s3 + $0xc8] sm:$0xff] }
  0x18   :  { %3751 = vmatprep.subr.bf16.mxu1 %v3750_v32  ;;  %v2812_v47 = vld [vmem:[%s5535_s3 + $0x138] sm:$0xff]  ;;  %v2829_v51 = vld [vmem:[%s5535_s3 + $0x1c0] sm:$0xff]  ;;  %v2830_v52 = vld [vmem:[%s5535_s3 + $0x1c8] sm:$0xff]  ;;  %v3724_v53 = vpack.c.bf16 %v79_v44, %v78_v43  ;;  %v3726_v55 = vpack.c.bf16 %v97_v50, %v96_v48 }
  0x19   :  { %v3756_v54 = vpack.c.bf16 %v2812_v47, %v2811_v46  ;;  %v80_v56 = vld [vmem:[%s5535_s3 + $0x40] sm:$0xff]  ;;  %v81_v57 = vld [vmem:[%s5535_s3 + $0x48] sm:$0xff]  ;;  %v3758_v59 = vpack.c.bf16 %v2830_v52, %v2829_v51  ;;  %v98_v61 = vld [vmem:[%s5535_s3 + $0xd0] sm:$0xff] }
  0x1a   :  { %3721 = vmatpush3.bf16.msra.mxu0 %v3720_v36  ;;  %v2813_v58 = vld [vmem:[%s5535_s3 + $0x140] sm:$0xff]  ;;  %v2814_v60 = vld [vmem:[%s5535_s3 + $0x148] sm:$0xff]  ;;  %v99_v62 = vld [vmem:[%s5535_s3 + $0xd8] sm:$0xff]  ;;  %v3728_v2 = vpack.c.bf16 %v81_v57, %v80_v56 }
  0x1b   :  { %3753 = vmatpush3.bf16.msra.mxu1 %v3752_v40  ;;  %3723 = vmatprep.subr.bf16.mxu0 %v3722_v41  ;;  %v2831_v0 = vld [vmem:[%s5535_s3 + $0x1d0] sm:$0xff]  ;;  %v2832_v1 = vld [vmem:[%s5535_s3 + $0x1d8] sm:$0xff]  ;;  %v3760_v3 = vpack.c.bf16 %v2814_v60, %v2813_v58  ;;  %v3730_v4 = vpack.c.bf16 %v99_v62, %v98_v61  ;;  %v100_v11 = vld [vmem:[%s5535_s3 + $0xe0] sm:$0xff]  ;;  %v4508_v40 = vsub.s32 0, %v106_v63 }
  0x1c   :  { %3755 = vmatprep.subr.bf16.mxu1 %v3754_v45  ;;  %v82_v5 = vld [vmem:[%s5535_s3 + $0x50] sm:$0xff]  ;;  %v83_v6 = vld [vmem:[%s5535_s3 + $0x58] sm:$0xff]  ;;  %v3762_v9 = vpack.c.bf16 %v2832_v1, %v2831_v0  ;;  %v101_v12 = vld [vmem:[%s5535_s3 + $0xe8] sm:$0xff] }
  0x1d   :  { %v2815_v7 = vld [vmem:[%s5535_s3 + $0x150] sm:$0xff]  ;;  %v2816_v10 = vld [vmem:[%s5535_s3 + $0x158] sm:$0xff]  ;;  %v2833_v14 = vld [vmem:[%s5535_s3 + $0x1e0] sm:$0xff]  ;;  %v3732_v16 = vpack.c.bf16 %v83_v6, %v82_v5  ;;  %v3734_v19 = vpack.c.bf16 %v101_v12, %v100_v11 }
  0x1e   :  { %3725 = vmatpush3.bf16.msra.mxu0 %v3724_v53  ;;  %v2834_v15 = vld [vmem:[%s5535_s3 + $0x1e8] sm:$0xff]  ;;  %v84_v17 = vld [vmem:[%s5535_s3 + $0x60] sm:$0xff]  ;;  %v3764_v18 = vpack.c.bf16 %v2816_v10, %v2815_v7  ;;  %v102_v25 = vld [vmem:[%s5535_s3 + $0xf0] sm:$0xff] }
  0x1f   :  { %3757 = vmatpush3.bf16.msra.mxu1 %v3756_v54  ;;  %3727 = vmatprep.subr.bf16.mxu0 %v3726_v55  ;;  %v85_v20 = vld [vmem:[%s5535_s3 + $0x68] sm:$0xff]  ;;  %v2817_v21 = vld [vmem:[%s5535_s3 + $0x160] sm:$0xff]  ;;  %v3766_v23 = vpack.c.bf16 %v2834_v15, %v2833_v14  ;;  %v103_v26 = vld [vmem:[%s5535_s3 + $0xf8] sm:$0xff] }
  0x20   :  { %3759 = vmatprep.subr.bf16.mxu1 %v3758_v59  ;;  %v71_v22 = vld [vmem:[%s5536_s5] sm:$0x3]  ;;  %v2818_v24 = vld [vmem:[%s5535_s3 + $0x168] sm:$0xff]  ;;  %v2835_v28 = vld [vmem:[%s5535_s3 + $0x1f0] sm:$0xff]  ;;  %v3736_v30 = vpack.c.bf16 %v85_v20, %v84_v17  ;;  %v3738_v32 = vpack.c.bf16 %v103_v26, %v102_v25 }
  0x21   :  { %v112_v27 = vrot.slane %v71_v22, %v111_v13  ;;  %v2836_v29 = vld [vmem:[%s5535_s3 + $0x1f8] sm:$0xff]  ;;  %v3768_v31 = vpack.c.bf16 %v2818_v24, %v2817_v21  ;;  %v86_v33 = vld [vmem:[%s5535_s3 + $0x70] sm:$0xff]  ;;  %v2853_v38 = vld [vmem:[%s5535_s3 + $0x280] sm:$0xff]  ;;  %v4523_v48 = vrot.slane %v71_v22, %v4508_v40 }
  0x22   :  { %3729 = vmatpush3.bf16.msra.mxu0 %v3728_v2  ;;  %v87_v34 = vld [vmem:[%s5535_s3 + $0x78] sm:$0xff]  ;;  %v2819_v35 = vld [vmem:[%s5535_s3 + $0x170] sm:$0xff]  ;;  %v3770_v36 = vpack.c.bf16 %v2836_v29, %v2835_v28  ;;  %v2854_v39 = vld [vmem:[%s5535_s3 + $0x288] sm:$0xff] }
  0x23   :  { %3761 = vmatpush3.bf16.msra.mxu1 %v3760_v3  ;;  %3731 = vmatprep.subr.bf16.mxu0 %v3730_v4  ;;  %v2820_v37 = vld [vmem:[%s5535_s3 + $0x178] sm:$0xff]  ;;  %v3740_v41 = vpack.c.bf16 %v87_v34, %v86_v33  ;;  %v3774_v43 = vpack.c.bf16 %v2854_v39, %v2853_v38  ;;  %v2837_v44 = vld [vmem:[%s5535_s3 + $0x200] sm:$0xff]  ;;  %v2838_v45 = vld [vmem:[%s5535_s3 + $0x208] sm:$0xff] }
  0x24   :  { %3763 = vmatprep.subr.bf16.mxu1 %v3762_v9  ;;  %179 = vmatprep.mubr.f32.mxu0 %v112_v27  ;;  %v3772_v42 = vpack.c.bf16 %v2820_v37, %v2819_v35  ;;  %v2855_v46 = vld [vmem:[%s5535_s3 + $0x290] sm:$0xff]  ;;  %v2856_v47 = vld [vmem:[%s5535_s3 + $0x298] sm:$0xff]  ;;  %v3776_v49 = vpack.c.bf16 %v2838_v45, %v2837_v44  ;;  %v392_v50 = vld [vmem:[%s5509_s7 + $0x8] sm:$0xff] }
  0x25   :  { %282 = vmatprep.mubr.f32.mxu1 %v112_v27  ;;  %v391_v51 = vld [vmem:[%s5509_s7] sm:$0xff]  ;;  %v3778_v52 = vpack.c.bf16 %v2856_v47, %v2855_v46  ;;  %v2839_v53 = vld [vmem:[%s5535_s3 + $0x210] sm:$0xff]  ;;  %v2840_v54 = vld [vmem:[%s5535_s3 + $0x218] sm:$0xff] }
  0x26   :  { %3733 = vmatpush3.bf16.msra.mxu0 %v3732_v16 }
  0x27   :  { %3765 = vmatpush3.bf16.msra.mxu1 %v3764_v18  ;;  %3735 = vmatprep.subr.bf16.mxu0 %v3734_v19 }
  0x28   :  { %3767 = vmatprep.subr.bf16.mxu1 %v3766_v23 }
  0x2a   :  { %3737 = vmatpush3.bf16.msra.mxu0 %v3736_v30 }
  0x2b   :  { %3769 = vmatpush3.bf16.msra.mxu1 %v3768_v31  ;;  %3739 = vmatprep.subr.bf16.mxu0 %v3738_v32 }
  0x2c   :  { %3771 = vmatprep.subr.bf16.mxu1 %v3770_v36 }
  0x2e   :  { %3741 = vmatpush3.bf16.msra.mxu0 %v3740_v41 }
  0x2f   :  { %3773 = vmatpush3.bf16.msra.mxu1 %v3772_v42  ;;  %3775 = vmatprep.subr.bf16.mxu0 %v3774_v43 }
  0x30   :  { %28 = vsyncpa [#allocation4], 0  ;;  %v2857_v55 = vld [vmem:[%s5535_s3 + $0x2a0] sm:$0xff]  ;;  %v2858_v56 = vld [vmem:[%s5535_s3 + $0x2a8] sm:$0xff]  ;;  %400 = vperm.xlu1 %4114, %v392_v50   ;;  %395 = vperm.xlu0 %4112, %v391_v51   ;;  %v3780_v57 = vpack.c.bf16 %v2840_v54, %v2839_v53  ;;  %v4185_v63 = vmov 1   ;;  %v4186_v6 = vmov 2  }
  0x31   :  { %180 = vmatmul.mubr.f32.vlgmr.msra.gmra.mrb[0].mxu0 %v4523_v48  ;;  %v3782_v58 = vpack.c.bf16 %v2858_v56, %v2857_v55  ;;  %v2841_v59 = vld [vmem:[%s5535_s3 + $0x220] sm:$0xff]  ;;  %v2842_v60 = vld [vmem:[%s5535_s3 + $0x228] sm:$0xff]  ;;  %v2859_v61 = vld [vmem:[%s5535_s3 + $0x2b0] sm:$0xff]  ;;  %vm455_vm0 = vcmask 1031168   ;;  %s5537_s7 = sld [smem:[#allocation8_spill]]  ;;  %vm538_vm1 = vcmask 1045504  }
  0x32   :  { %283 = vmatmul.mubr.f32.vlgmr.msra.gmra.mrb[0].mxu1 %v4523_v48  ;;  %3777 = vmatpush3.bf16.msra.mxu0 %v3776_v49  ;;  %v2860_v62 = vld [vmem:[%s5535_s3 + $0x2b8] sm:$0xff]  ;;  %v3784_v0 = vpack.c.bf16 %v2842_v60, %v2841_v59  ;;  %v2843_v2 = vld [vmem:[%s5535_s3 + $0x230] sm:$0xff]  ;;  %v2861_v4 = vld [vmem:[%s5535_s3 + $0x2c0] sm:$0xff]  ;;  %vm4187_vm2 = vmmov 1   ;;  %s5540_s5 = sld [smem:[#allocation9_spill]]  ;;  %vm819_vm4 = vcmask 506880  }
  0x33   :  { %3779 = vmatprep.subr.bf16.mxu0 %v3778_v52  ;;  %385 = vmatprep.mubr.f32.mxu0 %v112_v27  ;;  %v3786_v1 = vpack.c.bf16 %v2860_v62, %v2859_v61  ;;  %v2844_v3 = vld [vmem:[%s5535_s3 + $0x238] sm:$0xff]  ;;  %v2862_v5 = vld [vmem:[%s5535_s3 + $0x2c8] sm:$0xff]  ;;  %v2845_v10 = vld [vmem:[%s5535_s3 + $0x240] sm:$0xff]  ;;  %vm1106_vm5 = vcmask 392192   ;;  %vm1204_vm6 = vcmask 474112   ;;  %vm1345_vm7 = vcmask 1041408  }
  0x34   :  { %4115 = vset.pattern.permute.xlu1 %v4185_v63  ;;  %4113 = vset.pattern.permute.xlu0 %v4185_v63  ;;  %v3788_v7 = vpack.c.bf16 %v2844_v3, %v2843_v2  ;;  %v3790_v9 = vpack.c.bf16 %v2862_v5, %v2861_v4  ;;  %v2846_v11 = vld [vmem:[%s5535_s3 + $0x248] sm:$0xff]  ;;  %v2863_v12 = vld [vmem:[%s5535_s3 + $0x2d0] sm:$0xff]  ;;  %v2864_v13 = vld [vmem:[%s5535_s3 + $0x2d8] sm:$0xff]  ;;  %vm1653_vm9 = vcmask 1043456   ;;  %vm1640_vm11 = vcmask 228352   ;;  %s4191_s27 = smov [#allocation3]  }
  0x35   :  { %414 = vperm.xlu1 %4115, %v392_v50   ;;  %410 = vperm.xlu0 %4113, %v391_v51   ;;  %v441_v14 = vld [vmem:[%s5510_s8] sm:$0xff]  ;;  %v3792_v15 = vpack.c.bf16 %v2846_v11, %v2845_v10  ;;  %v3794_v16 = vpack.c.bf16 %v2864_v13, %v2863_v12  ;;  %v2847_v17 = vld [vmem:[%s5535_s3 + $0x250] sm:$0xff]  ;;  %v2848_v18 = vld [vmem:[%s5535_s3 + $0x258] sm:$0xff]  ;;  %vm2012_vm12 = vcmask 785408   ;;  %vm2174_vm13 = vcmask 195584  }
  0x36   :  { %3781 = vmatpush3.bf16.msra.mxu0 %v3780_v57  ;;  %v2865_v19 = vld [vmem:[%s5535_s3 + $0x2e0] sm:$0xff]  ;;  %v2866_v20 = vld [vmem:[%s5535_s3 + $0x2e8] sm:$0xff]  ;;  %v3796_v22 = vpack.c.bf16 %v2848_v18, %v2847_v17  ;;  %v2867_v26 = vld [vmem:[%s5535_s3 + $0x2f0] sm:$0xff]  ;;  %vm4189_vm14 = vmmov 0   ;;  %vm2789_vm15 = vcmask 8192  }
  0x37   :  { %3783 = vmatprep.subr.bf16.mxu0 %v3782_v58  ;;  %v442_v21 = vld [vmem:[%s5510_s8 + $0x8] sm:$0xff]  ;;  %v3798_v23 = vpack.c.bf16 %v2866_v20, %v2865_v19  ;;  %v2849_v24 = vld [vmem:[%s5535_s3 + $0x260] sm:$0xff]  ;;  %v2851_v29 = vld [vmem:[%s5535_s3 + $0x270] sm:$0xff] }
  0x38   :  { %v2850_v25 = vld [vmem:[%s5535_s3 + $0x268] sm:$0xff]  ;;  %v2852_v30 = vld [vmem:[%s5535_s3 + $0x278] sm:$0xff]  ;;  %v518_v19 = vld [vmem:[%s5537_s7 + $0x10] sm:$0xff] }
  0x39   :  { %4116 = vset.pattern.permute.xlu1 %v4186_v6  ;;  %4117 = vset.pattern.permute.xlu0 %v4186_v6  ;;  %v3800_v27 = vpack.c.bf16 %v2850_v25, %v2849_v24  ;;  %v3804_v31 = vpack.c.bf16 %v2852_v30, %v2851_v29  ;;  %v2873_v18 = vld [vmem:[%s5537_s7 + $0x88] sm:$0xff]  ;;  %v519_v20 = vld [vmem:[%s5537_s7 + $0x18] sm:$0xff]  ;;  %v520_v25 = vld [vmem:[%s5537_s7 + $0x20] sm:$0xff] }
  0x3a   :  { %3785 = vmatpush3.bf16.msra.mxu0 %v3784_v0  ;;  %426 = vperm.xlu1 %4116, %v391_v51   ;;  %v2875_v24 = vld [vmem:[%s5537_s7 + $0x98] sm:$0xff]  ;;  %vm4752_vm3 = vmpackc.low %vm538_vm1, %vm4187_vm2 }
  0x3b   :  { %3787 = vmatprep.subr.bf16.mxu0 %v3786_v1  ;;  %430 = vperm.xlu0 %4117, %v392_v50   ;;  %vm5051_vm8 = vmpackc.low %vm1345_vm7, %vm4187_vm2 }
  0x3c   :  { %vm5172_vm10 = vmpackc.low %vm1653_vm9, %vm4187_vm2 }
  0x3e   :  { %3789 = vmatpush3.bf16.msra.mxu0 %v3788_v7  ;;  %4118 = vset.pattern.permute.xlu1 %v4184_v8 }
  0x3f   :  { %3791 = vmatprep.subr.bf16.mxu0 %v3790_v9  ;;  %445 = vperm.xlu1 %4118, %v441_v14   ;;  %v516_v14 = vld [vmem:[%s5537_s7] sm:$0xff] }
  0x40   :  { %4119 = vset.pattern.permute.xlu0 %v4184_v8  ;;  %v2868_v8 = vld [vmem:[%s5535_s3 + $0x2f8] sm:$0xff] }
  0x41   :  { %v3802_v28 = vpack.c.bf16 %v2868_v8, %v2867_v26  ;;  %v521_v8 = vld [vmem:[%s5537_s7 + $0x28] sm:$0xff] }
  0x42   :  { %3793 = vmatpush3.bf16.msra.mxu0 %v3792_v15  ;;  %v517_v15 = vld [vmem:[%s5537_s7 + $0x8] sm:$0xff]  ;;  %v3814_v29 = vpack.c.bf16 %v521_v8, %v520_v25  ;;  %v1084_v25 = vld [vmem:[%s5514_s12 + $0x10] sm:$0xff] }
  0x43   :  { %3795 = vmatprep.subr.bf16.mxu0 %v3794_v16  ;;  %450 = vperm.xlu1 %4118, %v442_v21   ;;  %v2872_v16 = vld [vmem:[%s5537_s7 + $0x80] sm:$0xff]  ;;  %v3806_v17 = vpack.c.bf16 %v517_v15, %v516_v14  ;;  %v531_v14 = vld [vmem:[%s5537_s7 + $0x78] sm:$0x3f] }
  0x44   :  { %v3840_v21 = vpack.c.bf16 %v2873_v18, %v2872_v16 }
  0x45   :  { %3807 = vmatprep.subr.bf16.mxu1 %v3806_v17 }
  0x46   :  { %3797 = vmatpush3.bf16.msra.mxu0 %v3796_v22  ;;  %v3810_v22 = vpack.c.bf16 %v519_v20, %v518_v19  ;;  %3809 = vmatpush3.bf16.msra.mxu1 %v3806_v17  ;;  %v2886_v17 = vld [vmem:[%s5537_s7 + $0xf0] sm:$0xff]  ;;  %v1082_v20 = vld [vmem:[%s5514_s12] sm:$0xff] }
  0x47   :  { %3799 = vmatprep.subr.bf16.mxu0 %v3798_v23  ;;  %v2874_v23 = vld [vmem:[%s5537_s7 + $0x90] sm:$0xff] }
  0x48   :  { %v3844_v26 = vpack.c.bf16 %v2875_v24, %v2874_v23  ;;  %3811 = vmatprep.subr.bf16.mxu1 %v3810_v22  ;;  %v1083_v24 = vld [vmem:[%s5514_s12 + $0x8] sm:$0xff] }
  0x4a   :  { %3801 = vmatpush3.bf16.msra.mxu0 %v3800_v27  ;;  %v2876_v27 = vld [vmem:[%s5537_s7 + $0xa0] sm:$0xff]  ;;  %3813 = vmatpush3.bf16.msra.mxu1 %v3810_v22  ;;  %v2892_v22 = vld [vmem:[%s5537_s7 + $0x108] sm:$0xff] }
  0x4b   :  { %3803 = vmatprep.subr.bf16.mxu0 %v3802_v28  ;;  %v2877_v28 = vld [vmem:[%s5537_s7 + $0xa8] sm:$0xff]  ;;  %3815 = vmatprep.subr.bf16.mxu1 %v3814_v29 }
  0x4c   :  { %v3848_v30 = vpack.c.bf16 %v2877_v28, %v2876_v27 }
  0x4e   :  { %3805 = vmatpush3.bf16.msra.mxu0 %v3804_v31  ;;  %v522_v31 = vld [vmem:[%s5537_s7 + $0x30] sm:$0xff]  ;;  %3817 = vmatpush3.bf16.msra.mxu1 %v3814_v29 }
  0x4f   :  { %3841 = vmatprep.subr.bf16.mxu0 %v3840_v21 }
  0x51   :  { %386 = vmatmul.mubr.f32.vlgmr.msra.gmra.mrb[2].mxu0 %v4523_v48 }
  0x52   :  { %3843 = vmatpush3.bf16.msra.mxu0 %v3840_v21  ;;  %v2891_v21 = vld [vmem:[%s5537_s7 + $0x100] sm:$0xff] }
  0x53   :  { %3845 = vmatprep.subr.bf16.mxu0 %v3844_v26  ;;  %v3874_v23 = vpack.c.bf16 %v2892_v22, %v2891_v21  ;;  %v2925_v21 = vld [vmem:[%s5540_s5 + $0x88] sm:$0xff] }
  0x56   :  { %3847 = vmatpush3.bf16.msra.mxu0 %v3844_v26  ;;  %v1085_v26 = vld [vmem:[%s5514_s12 + $0x18] sm:$0xff]  ;;  %s5541_s12 = sld [smem:[#allocation10_spill]] }
  0x57   :  { %3849 = vmatprep.subr.bf16.mxu0 %v3848_v30 }
  0x5a   :  { %3851 = vmatpush3.bf16.msra.mxu0 %v3848_v30 }
  0xaf   :  { %v401_v32 = vpop.permute.xlu1 %400  ;;  %v396_v33 = vpop.permute.xlu0 %395 }
  0xb4   :  { %v415_v42 = vpop.permute.xlu1 %414  ;;  %v411_v43 = vpop.permute.xlu0 %410 }
  0xb9   :  { %v427_v51 = vpop.permute.xlu1 %426 }
  0xba   :  { %v431_v56 = vpop.permute.xlu0 %430 }
  0xbe   :  { %v446_v54 = vpop.permute.xlu1 %445 }
  0xc2   :  { %v451_v60 = vpop.permute.xlu1 %450 }
 0x104   :  { %v3050_v34 = vpop.f32.mrb[0].mxu0 }
 0x105   :  { %v3085_v35 = vpop.f32.mrb[0].mxu1  ;;  %v3051_v36 = vpop.f32.mrb[1].mxu0 }
 0x106   :  { %v3052_v37 = vadd.f32 %v3051_v36, %v3050_v34  ;;  %v3086_v38 = vpop.f32.mrb[1].mxu1  ;;  %v2879_v34 = vld [vmem:[%s5537_s7 + $0xb8] sm:$0xff] }
 0x107   :  { %v3087_v39 = vadd.f32 %v3086_v38, %v3085_v35  ;;  %v525_v38 = vld [vmem:[%s5537_s7 + $0x48] sm:$0xff] }
 0x108   :  { %v406_v41 = vrot.slane %v3052_v37, %v4508_v40  ;;  %v524_v37 = vld [vmem:[%s5537_s7 + $0x40] sm:$0xff] }
 0x109   :  { %v420_v44 = vrot.slane %v3087_v39, %v4508_v40  ;;  %v2880_v39 = vld [vmem:[%s5537_s7 + $0xc0] sm:$0xff] }
 0x10a   :  { %v408_v45 = vmul.f32 %v406_v41, %v401_v32  ;;  %v407_v46 = vmul.f32 %v406_v41, %v396_v33  ;;  %v523_v32 = vld [vmem:[%s5537_s7 + $0x38] sm:$0xff]  ;;  %v2878_v33 = vld [vmem:[%s5537_s7 + $0xb0] sm:$0xff]  ;;  %v2881_v41 = vld [vmem:[%s5537_s7 + $0xc8] sm:$0xff] }
 0x10b   :  { %v422_v47 = vmul.f32 %v420_v44, %v415_v42  ;;  %v421_v49 = vmul.f32 %v420_v44, %v411_v43  ;;  %v3818_v35 = vpack.c.bf16 %v523_v32, %v522_v31  ;;  %v3852_v36 = vpack.c.bf16 %v2879_v34, %v2878_v33  ;;  %v526_v44 = vld [vmem:[%s5537_s7 + $0x50] sm:$0xff] }
 0x10c   :  { %v3822_v42 = vpack.c.bf16 %v525_v38, %v524_v37  ;;  %v3856_v43 = vpack.c.bf16 %v2881_v41, %v2880_v39  ;;  %v2893_v34 = vld [vmem:[%s5537_s7 + $0x110] sm:$0xff]  ;;  %v2896_v38 = vld [vmem:[%s5537_s7 + $0x128] sm:$0xff] }
 0x10d   :  { %v424_v50 = vadd.f32 %v422_v47, %v408_v45  ;;  %v423_v48 = vadd.f32 %v421_v49, %v407_v46  ;;  %3819 = vmatprep.subr.bf16.mxu1 %v3818_v35  ;;  %3853 = vmatprep.subr.bf16.mxu0 %v3852_v36  ;;  %v527_v45 = vld [vmem:[%s5537_s7 + $0x58] sm:$0xff]  ;;  %v2897_v41 = vld [vmem:[%s5537_s7 + $0x130] sm:$0xff] }
 0x10e   :  { %3821 = vmatpush3.bf16.msra.mxu1 %v3818_v35  ;;  %3855 = vmatpush3.bf16.msra.mxu0 %v3852_v36  ;;  %v3826_v46 = vpack.c.bf16 %v527_v45, %v526_v44  ;;  %v2894_v35 = vld [vmem:[%s5537_s7 + $0x118] sm:$0xff]  ;;  %v2899_v44 = vld [vmem:[%s5537_s7 + $0x140] sm:$0xff]  ;;  %v2900_v45 = vld [vmem:[%s5537_s7 + $0x148] sm:$0xff] }
 0x10f   :  { %3823 = vmatprep.subr.bf16.mxu1 %v3822_v42  ;;  %3857 = vmatprep.subr.bf16.mxu0 %v3856_v43  ;;  %v3878_v37 = vpack.c.bf16 %v2894_v35, %v2893_v34  ;;  %v2928_v35 = vld [vmem:[%s5540_s5 + $0xa0] sm:$0xff] }
 0x112   :  { %3825 = vmatpush3.bf16.msra.mxu1 %v3822_v42  ;;  %3859 = vmatpush3.bf16.msra.mxu0 %v3856_v43  ;;  %v2898_v42 = vld [vmem:[%s5537_s7 + $0x138] sm:$0xff] }
 0x113   :  { %3827 = vmatprep.subr.bf16.mxu1 %v3826_v46  ;;  %v3886_v43 = vpack.c.bf16 %v2898_v42, %v2897_v41 }
 0x116   :  { %3829 = vmatpush3.bf16.msra.mxu1 %v3826_v46  ;;  %v3890_v46 = vpack.c.bf16 %v2900_v45, %v2899_v44 }
 0x124   :  { %v3120_v52 = vpop.f32.mrb[2].mxu0 }
 0x125   :  { %v3121_v53 = vpop.f32.mrb[3].mxu0 }
 0x126   :  { %v3122_v55 = vadd.f32 %v3121_v53, %v3120_v52  ;;  %v480_v53 = vld [vmem:[%s5511_s9] sm:$0xff] }
 0x128   :  { %v436_v57 = vrot.slane %v3122_v55, %v4508_v40 }
 0x12a   :  { %v437_v58 = vmul.f32 %v436_v57, %v427_v51  ;;  %v438_v59 = vmul.f32 %v436_v57, %v431_v56  ;;  %v2882_v56 = vld [vmem:[%s5537_s7 + $0xd0] sm:$0xff]  ;;  %v2883_v57 = vld [vmem:[%s5537_s7 + $0xd8] sm:$0xff] }
 0x12c   :  { %v439_v61 = vadd.f32 %v437_v58, %v423_v48  ;;  %v440_v62 = vadd.f32 %v438_v59, %v424_v50  ;;  %v484_v58 = vld [vmem:[%s5512_s10] sm:$0xff]  ;;  %v481_v59 = vld [vmem:[%s5511_s9 + $0x8] sm:$0xff] }
 0x12e   :  { %v4623_v63 = vadd.f32 %v446_v54, %v439_v61  ;;  %v4625_v0 = vadd.f32 %v451_v60, %v440_v62  ;;  %v3860_v60 = vpack.c.bf16 %v2883_v57, %v2882_v56  ;;  %v528_v62 = vld [vmem:[%s5537_s7 + $0x60] sm:$0xff]  ;;  %v812_v57 = vld [vmem:[%s5540_s5 + $0x8] sm:$0xff] }
 0x12f   :  { %v811_v56 = vld [vmem:[%s5540_s5] sm:$0xff] }
 0x130   :  { %v459_v1 = vsel %vm455_vm0, %v4625_v0, 0.0  ;;  %v456_v2 = vsel %vm455_vm0, %v4623_v63, 0.0  ;;  %3861 = vmatprep.subr.bf16.mxu0 %v3860_v60 }
 0x131   :  { %460 = vadd.xlane.f32.xlu1 %v459_v1  ;;  %457 = vadd.xlane.f32.xlu0 %v456_v2  ;;  %v529_v1 = vld [vmem:[%s5537_s7 + $0x68] sm:$0xff] }
 0x132   :  { %3863 = vmatpush3.bf16.msra.mxu0 %v3860_v60  ;;  %v2914_v60 = vld [vmem:[%s5540_s5 + $0x48] sm:$0xff] }
 0x1be   :  { %v461_v3 = vpop.xlane.xlu1 %460  ;;  %v458_v4 = vpop.xlane.xlu0 %457 }
 0x1bf   :  { %v4631_v5 = vmul.f32 0.007936508, %v461_v3  ;;  %v4633_v6 = vmul.f32 0.007936508, %v458_v4  ;;  %v3830_v3 = vpack.c.bf16 %v529_v1, %v528_v62  ;;  %v814_v62 = vld [vmem:[%s5540_s5 + $0x18] sm:$0xff] }
 0x1c1   :  { %v465_v7 = vsub.f32 %v4625_v0, %v4631_v5  ;;  %v464_v9 = vsub.f32 %v4623_v63, %v4633_v6  ;;  %3831 = vmatprep.subr.bf16.mxu1 %v3830_v3 }
 0x1c2   :  { %3833 = vmatpush3.bf16.msra.mxu1 %v3830_v3  ;;  %v2915_v3 = vld [vmem:[%s5540_s5 + $0x50] sm:$0xff] }
 0x1c3   :  { %v466_v10 = vmul.f32 %v464_v9, %v464_v9  ;;  %v467_v12 = vmul.f32 %v465_v7, %v465_v7  ;;  %v2884_v9 = vld [vmem:[%s5537_s7 + $0xe0] sm:$0xff] }
 0x1c5   :  { %v468_v11 = vsel %vm455_vm0, %v466_v10, 0.0  ;;  %v471_v13 = vsel %vm455_vm0, %v467_v12, 0.0  ;;  %v485_v10 = vld [vmem:[%s5512_s10 + $0x8] sm:$0xff] }
 0x1c6   :  { %469 = vadd.xlane.f32.xlu0 %v468_v11 }
 0x1ca   :  { %472 = vadd.xlane.f32.xlu0 %v471_v13  ;;  %v530_v13 = vld [vmem:[%s5537_s7 + $0x70] sm:$0xff] }
 0x1cb   :  { %v3834_v16 = vpack.c.bf16 %v531_v14, %v530_v13  ;;  %v817_v14 = vld [vmem:[%s5540_s5 + $0x30] sm:$0xff] }
 0x1cd   :  { %3836 = vmatprep.subr.msk.bf16.mxu1 %vm4752_vm3, %v3834_v16 }
 0x1ce   :  { %3839 = vmatpush3.bf16.msk.msra.mxu1 %vm4752_vm3, %v3834_v16 }
 0x1cf   :  { %3875 = vmatprep.subr.bf16.mxu1 %v3874_v23 }
 0x253   :  { %v470_v47 = vpop.xlane.xlu0 %469 }
 0x254   :  { %v474_v49 = vmul.f32 0.007936508, %v470_v47  ;;  %v2901_v47 = vld [vmem:[%s5537_s7 + $0x150] sm:$0xff] }
 0x256   :  { %v476_v50 = vadd.f32 1e-05, %v474_v49  ;;  %v2902_v49 = vld [vmem:[%s5537_s7 + $0x158] sm:$0xff] }
 0x257   :  { %v473_v48 = vpop.xlane.xlu0 %472 }
 0x258   :  { %4120 = vrsqrt.f32 %v476_v50  ;;  %v475_v51 = vmul.f32 0.007936508, %v473_v48  ;;  %v3894_v50 = vpack.c.bf16 %v2902_v49, %v2901_v47  ;;  %v2903_v48 = vld [vmem:[%s5537_s7 + $0x160] sm:$0xff] }
 0x25a   :  { %v477_v52 = vadd.f32 1e-05, %v475_v51  ;;  %v2904_v51 = vld [vmem:[%s5537_s7 + $0x168] sm:$0xff] }
 0x25c   :  { %4122 = vrsqrt.f32 %v477_v52  ;;  %v3898_v52 = vpack.c.bf16 %v2904_v51, %v2903_v48  ;;  %v1080_v48 = vld [vmem:[%s5513_s11 + $0x10] sm:$0xff]  ;;  %v1081_v51 = vld [vmem:[%s5513_s11 + $0x18] sm:$0xff] }
 0x262   :  { %v4121_v54 = vpop.eup %4120 }
 0x263   :  { %v482_v55 = vmul.f32 %v4121_v54, %v480_v53  ;;  %v2905_v53 = vld [vmem:[%s5537_s7 + $0x170] sm:$0xff]  ;;  %v2906_v54 = vld [vmem:[%s5537_s7 + $0x178] sm:$0x3f] }
 0x265   :  { %492 = vperm.xlu1 %4118, %v482_v55   ;;  %v486_v61 = vmul.f32 %v482_v55, %v4633_v6  ;;  %v2885_v6 = vld [vmem:[%s5537_s7 + $0xe8] sm:$0xff]  ;;  %v3902_v55 = vpack.c.bf16 %v2906_v54, %v2905_v53 }
 0x266   :  { %v4123_v2 = vpop.eup %4122  ;;  %v3864_v11 = vpack.c.bf16 %v2885_v6, %v2884_v9  ;;  %v816_v6 = vld [vmem:[%s5540_s5 + $0x28] sm:$0xff] }
 0x267   :  { %v488_v4 = vsub.f32 %v484_v58, %v486_v61  ;;  %v483_v7 = vmul.f32 %v4123_v2, %v481_v59  ;;  %v2913_v58 = vld [vmem:[%s5540_s5 + $0x40] sm:$0xff]  ;;  %v3908_v59 = vpack.c.bf16 %v812_v57, %v811_v56  ;;  %v813_v61 = vld [vmem:[%s5540_s5 + $0x10] sm:$0xff] }
 0x268   :  { %3865 = vmatprep.subr.bf16.mxu0 %v3864_v11  ;;  %v3926_v1 = vpack.c.bf16 %v2914_v60, %v2913_v58  ;;  %v3912_v2 = vpack.c.bf16 %v814_v62, %v813_v61 }
 0x269   :  { %504 = vperm.xlu1 %4118, %v488_v4   ;;  %497 = vperm.xlu0 %4119, %v483_v7   ;;  %v487_v12 = vmul.f32 %v483_v7, %v4631_v5  ;;  %v2887_v5 = vld [vmem:[%s5537_s7 + $0xf8] sm:$0x3f]  ;;  %v815_v7 = vld [vmem:[%s5540_s5 + $0x20] sm:$0xff] }
 0x26a   :  { %3867 = vmatpush3.bf16.msra.mxu0 %v3864_v11  ;;  %v3868_v19 = vpack.c.bf16 %v2887_v5, %v2886_v17  ;;  %v2916_v4 = vld [vmem:[%s5540_s5 + $0x58] sm:$0xff]  ;;  %v2918_v11 = vld [vmem:[%s5540_s5 + $0x68] sm:$0xff]  ;;  %v2919_v17 = vld [vmem:[%s5540_s5 + $0x70] sm:$0xff] }
 0x26b   :  { %v489_v15 = vsub.f32 %v485_v10, %v487_v12  ;;  %v3930_v9 = vpack.c.bf16 %v2916_v4, %v2915_v3  ;;  %v2917_v10 = vld [vmem:[%s5540_s5 + $0x60] sm:$0xff]  ;;  %v3916_v12 = vpack.c.bf16 %v816_v6, %v815_v7  ;;  %v2920_v5 = vld [vmem:[%s5540_s5 + $0x78] sm:$0x3f] }
 0x26c   :  { %3870 = vmatprep.subr.msk.bf16.mxu0 %vm4752_vm3, %v3868_v19  ;;  %v3934_v13 = vpack.c.bf16 %v2918_v11, %v2917_v10 }
 0x26d   :  { %509 = vperm.xlu1 %4118, %v489_v15   ;;  %v818_v15 = vld [vmem:[%s5540_s5 + $0x38] sm:$0x3f] }
 0x26e   :  { %3873 = vmatpush3.bf16.msk.msra.mxu0 %vm4752_vm3, %v3868_v19  ;;  %v3920_v16 = vpack.c.bf16 %v818_v15, %v817_v14  ;;  %v3938_v19 = vpack.c.bf16 %v2920_v5, %v2919_v17 }
 0x26f   :  { %3909 = vmatprep.subr.bf16.mxu0 %v3908_v59 }
 0x271   :  { %1088 = vperm.xlu1 %4118, %v1082_v20   ;;  %v2924_v20 = vld [vmem:[%s5540_s5 + $0x80] sm:$0xff] }
 0x272   :  { %v3944_v22 = vpack.c.bf16 %v2925_v21, %v2924_v20 }
 0x275   :  { %1093 = vperm.xlu1 %4118, %v1083_v24  }
 0x279   :  { %1098 = vperm.xlu1 %4118, %v1084_v25  }
 0x27d   :  { %1103 = vperm.xlu1 %4118, %v1085_v26  }
 0x2e4   :  { %v493_v8 = vpop.permute.xlu1 %492 }
 0x2e5   :  { %v500_v27 = vmul.f32 %v493_v8, %v4623_v63 }
 0x2e8   :  { %v505_v28 = vpop.permute.xlu1 %504  ;;  %v498_v29 = vpop.permute.xlu0 %497 }
 0x2e9   :  { %v512_v30 = vadd.f32 %v505_v28, %v500_v27  ;;  %v501_v32 = vmul.f32 %v498_v29, %v4625_v0  ;;  %v2895_v0 = vld [vmem:[%s5537_s7 + $0x120] sm:$0xff]  ;;  %v2926_v29 = vld [vmem:[%s5540_s5 + $0x90] sm:$0xff] }
 0x2ea   :  { %v3882_v39 = vpack.c.bf16 %v2896_v38, %v2895_v0  ;;  %v2931_v0 = vld [vmem:[%s5540_s5 + $0xb8] sm:$0x3f] }
 0x2eb   :  { %v514_v31 = vmax.f32 %v512_v30, 0.0  ;;  %v2927_v30 = vld [vmem:[%s5540_s5 + $0x98] sm:$0xff] }
 0x2ec   :  { %v510_v33 = vpop.permute.xlu1 %509  ;;  %v3948_v34 = vpack.c.bf16 %v2927_v30, %v2926_v29  ;;  %v2944_v29 = vld [vmem:[%s5541_s12 + $0x40] sm:$0xff] }
 0x2ed   :  { %v513_v36 = vadd.f32 %v510_v33, %v501_v32  ;;  %3361 = vmatprep.mubr.msk.f32.mxu1 %vm455_vm0, %v514_v31  ;;  %3396 = vmatprep.mubr.msk.f32.mxu0 %vm455_vm0, %v514_v31 }
 0x2ef   :  { %v515_v63 = vmax.f32 %v513_v36, 0.0  ;;  %v2929_v36 = vld [vmem:[%s5540_s5 + $0xa8] sm:$0xff] }
 0x2f1   :  { %3362 = vmatmul.mubr.msk.f32.vlgmr.msra.gmra.mrb[2].mxu1 %vm455_vm0, %v515_v63  ;;  %3397 = vmatmul.mubr.msk.f32.vlgmr.msra.gmra.mrb[4].mxu0 %vm455_vm0, %v515_v63 }
 0x2f2   :  { %3877 = vmatpush3.bf16.msra.mxu1 %v3874_v23  ;;  %3431 = vmatprep.mubr.msk.f32.mxu1 %vm455_vm0, %v514_v31 }
 0x2f3   :  { %3879 = vmatprep.subr.bf16.mxu1 %v3878_v37  ;;  %3911 = vmatpush3.bf16.msra.mxu0 %v3908_v59 }
 0x2f4   :  { %3913 = vmatprep.subr.bf16.mxu0 %v3912_v2 }
 0x2f6   :  { %3881 = vmatpush3.bf16.msra.mxu1 %v3878_v37  ;;  %v2930_v37 = vld [vmem:[%s5540_s5 + $0xb0] sm:$0xff] }
 0x2f7   :  { %3883 = vmatprep.subr.bf16.mxu1 %v3882_v39  ;;  %3915 = vmatpush3.bf16.msra.mxu0 %v3912_v2  ;;  %v3956_v38 = vpack.c.bf16 %v2931_v0, %v2930_v37 }
 0x2f8   :  { %3917 = vmatprep.subr.bf16.mxu0 %v3916_v12 }
 0x2fa   :  { %3885 = vmatpush3.bf16.msra.mxu1 %v3882_v39  ;;  %v1078_v39 = vld [vmem:[%s5513_s11] sm:$0xff] }
 0x2fb   :  { %3887 = vmatprep.subr.bf16.mxu1 %v3886_v43  ;;  %3919 = vmatpush3.bf16.msra.mxu0 %v3916_v12 }
 0x2fc   :  { %3922 = vmatprep.subr.msk.bf16.mxu0 %vm4752_vm3, %v3920_v16 }
 0x2fe   :  { %3889 = vmatpush3.bf16.msra.mxu1 %v3886_v43 }
 0x2ff   :  { %3891 = vmatprep.subr.bf16.mxu1 %v3890_v46  ;;  %3925 = vmatpush3.bf16.msk.msra.mxu0 %vm4752_vm3, %v3920_v16 }
 0x300   :  { %3945 = vmatprep.subr.bf16.mxu0 %v3944_v22 }
 0x302   :  { %3893 = vmatpush3.bf16.msra.mxu1 %v3890_v46 }
 0x303   :  { %3895 = vmatprep.subr.bf16.mxu1 %v3894_v50 }
 0x306   :  { %3897 = vmatpush3.bf16.msra.mxu1 %v3894_v50  ;;  %v1079_v50 = vld [vmem:[%s5513_s11 + $0x8] sm:$0xff]  ;;  %s5544_s11 = sld [smem:[#allocation11_spill]] }
 0x307   :  { %3899 = vmatprep.subr.bf16.mxu1 %v3898_v52 }
 0x30a   :  { %3901 = vmatpush3.bf16.msra.mxu1 %v3898_v52  ;;  %v1089_v52 = vpop.permute.xlu1 %1088 }
 0x30b   :  { %3904 = vmatprep.subr.msk.bf16.mxu1 %vm4752_vm3, %v3902_v55 }
 0x30e   :  { %3907 = vmatpush3.bf16.msk.msra.mxu1 %vm4752_vm3, %v3902_v55  ;;  %v1094_v53 = vpop.permute.xlu1 %1093 }
 0x30f   :  { %3927 = vmatprep.subr.bf16.mxu1 %v3926_v1 }
 0x311   :  { %3432 = vmatmul.mubr.msk.f32.vlgmr.msra.gmra.mrb[4].mxu1 %vm455_vm0, %v515_v63  ;;  %v3952_v63 = vpack.c.bf16 %v2929_v36, %v2928_v35 }
 0x312   :  { %3929 = vmatpush3.bf16.msra.mxu1 %v3926_v1  ;;  %v1099_v54 = vpop.permute.xlu1 %1098 }
 0x313   :  { %3931 = vmatprep.subr.bf16.mxu1 %v3930_v9 }
 0x316   :  { %3933 = vmatpush3.bf16.msra.mxu1 %v3930_v9  ;;  %v1104_v60 = vpop.permute.xlu1 %1103 }
 0x317   :  { %3935 = vmatprep.subr.bf16.mxu1 %v3934_v13 }
 0x31a   :  { %3937 = vmatpush3.bf16.msra.mxu1 %v3934_v13 }
 0x31b   :  { %3940 = vmatprep.subr.msk.bf16.mxu1 %vm4752_vm3, %v3938_v19 }
 0x31e   :  { %3943 = vmatpush3.bf16.msk.msra.mxu1 %vm4752_vm3, %v3938_v19 }
 0x3c4   :  { %v3363_v23 = vpop.f32.mrb[2].mxu1  ;;  %v3398_v24 = vpop.f32.mrb[4].mxu0 }
 0x3c5   :  { %v713_v25 = vmax.f32 %v3363_v23, %v3398_v24  ;;  %v608_v26 = vpop.f32.mrb[3].mxu1  ;;  %v703_v8 = vpop.f32.mrb[5].mxu0 }
 0x3c6   :  { %v712_v27 = vmax.f32 %v608_v26, %v703_v8 }
 0x3e4   :  { %v3433_v28 = vpop.f32.mrb[4].mxu1 }
 0x3e5   :  { %v810_v31 = vmax.f32 %v713_v25, %v3433_v28  ;;  %v800_v32 = vpop.f32.mrb[5].mxu1  ;;  %v1326_v28 = vld [vmem:[%s5541_s12 + $0x8] sm:$0xff] }
 0x3e6   :  { %v809_v33 = vmax.f32 %v712_v27, %v800_v32  ;;  %v1325_v27 = vld [vmem:[%s5541_s12] sm:$0xff] }
 0x3e7   :  { %v3974_v30 = vpack.c.bf16 %v1326_v28, %v1325_v27  ;;  %v2957_v27 = vld [vmem:[%s5541_s12 + $0x80] sm:$0xff]  ;;  %v2958_v28 = vld [vmem:[%s5541_s12 + $0x88] sm:$0xff] }
 0x3e8   :  { %3450 = vmatprep.mubr.msk.f32.mxu0 %vm819_vm4, %v809_v33  ;;  %3469 = vmatprep.mubr.msk.f32.mxu1 %vm819_vm4, %v809_v33 }
 0x3e9   :  { %3451 = vmatmul.mubr.msk.f32.vlgmr.msra.gmra.mrb[6].mxu0 %vm819_vm4, %v810_v31  ;;  %3470 = vmatmul.mubr.msk.f32.vlgmr.msra.gmra.mrb[6].mxu1 %vm819_vm4, %v810_v31 }
 0x3ea   :  { %3947 = vmatpush3.bf16.msra.mxu0 %v3944_v22  ;;  %3488 = vmatprep.mubr.msk.f32.mxu0 %vm819_vm4, %v809_v33 }
 0x3eb   :  { %3949 = vmatprep.subr.bf16.mxu0 %v3948_v34  ;;  %3503 = vmatprep.mubr.msk.f32.mxu1 %vm1106_vm5, %v1078_v39 }
 0x3ee   :  { %3951 = vmatpush3.bf16.msra.mxu0 %v3948_v34 }
 0x3ef   :  { %3953 = vmatprep.subr.bf16.mxu0 %v3952_v63 }
 0x3f2   :  { %3955 = vmatpush3.bf16.msra.mxu0 %v3952_v63 }
 0x3f3   :  { %3958 = vmatprep.subr.msk.bf16.mxu0 %vm4752_vm3, %v3956_v38 }
 0x3f6   :  { %3961 = vmatpush3.bf16.msk.msra.mxu0 %vm4752_vm3, %v3956_v38 }
 0x3f9   :  { %3489 = vmatmul.mubr.msk.f32.vlgmr.msra.gmra.mrb[8].mxu0 %vm819_vm4, %v810_v31  ;;  %v2945_v31 = vld [vmem:[%s5541_s12 + $0x48] sm:$0xff] }
 0x3fa   :  { %v3992_v32 = vpack.c.bf16 %v2945_v31, %v2944_v29  ;;  %v1940_v29 = vld [vmem:[%s5518_s16] sm:$0xff] }
 0x3fc   :  { %3993 = vmatprep.subr.bf16.mxu0 %v3992_v32 }
 0x3fd   :  { %3995 = vmatpush3.bf16.msra.mxu0 %v3992_v32  ;;  %v1264_v32 = vld [vmem:[%s5516_s14 + $0x18] sm:$0xff] }
 0x4bc   :  { %v3452_v41 = vpop.f32.mrb[6].mxu0  ;;  %v3471_v42 = vpop.f32.mrb[6].mxu1 }
 0x4bd   :  { %v895_v43 = vpop.f32.mrb[7].mxu0  ;;  %v982_v44 = vpop.f32.mrb[7].mxu1 }
 0x4be   :  { %v3962_v45 = vpack.c.bf16 %v3452_v41, %v895_v43  ;;  %v3966_v46 = vpack.c.bf16 %v3471_v42, %v982_v44  ;;  %v1254_v44 = vld [vmem:[%s5515_s13 + $0x8] sm:$0xff] }
 0x4c0   :  { %3963 = vmatprep.subr.bf16.mxu1 %v3962_v45 }
 0x4c1   :  { %3965 = vmatpush3.bf16.msra.mxu1 %v3962_v45  ;;  %v1253_v45 = vld [vmem:[%s5515_s13] sm:$0xff] }
 0x4c2   :  { %3967 = vmatprep.subr.bf16.mxu1 %v3966_v46 }
 0x4c5   :  { %3969 = vmatpush3.bf16.msra.mxu1 %v3966_v46 }
 0x4cc   :  { %v3490_v18 = vpop.f32.mrb[8].mxu0 }
 0x4cd   :  { %v1069_v47 = vpop.f32.mrb[9].mxu0 }
 0x4ce   :  { %v3970_v49 = vpack.c.bf16 %v3490_v18, %v1069_v47  ;;  %v1327_v18 = vld [vmem:[%s5541_s12 + $0x10] sm:$0xff]  ;;  %v1328_v47 = vld [vmem:[%s5541_s12 + $0x18] sm:$0xff] }
 0x4d0   :  { %3971 = vmatprep.subr.bf16.mxu1 %v3970_v49 }
 0x4d1   :  { %3973 = vmatpush3.bf16.msra.mxu1 %v3970_v49 }
 0x4d2   :  { %3975 = vmatprep.subr.bf16.mxu1 %v3974_v30 }
 0x4d4   :  { %3504 = vmatmul.mubr.msk.f32.vlgmr.msra.gmra.mrb[8].mxu1 %vm1106_vm5, %v1079_v50 }
 0x4d5   :  { %3506 = vmatprep.mubr.msk.f32.mxu1 %vm1106_vm5, %v1080_v48  ;;  %3977 = vmatpush3.bf16.msra.mxu1 %v3974_v30  ;;  %v3978_v48 = vpack.c.bf16 %v1328_v47, %v1327_v18  ;;  %v4010_v30 = vpack.c.bf16 %v2958_v28, %v2957_v27 }
 0x4d7   :  { %3979 = vmatprep.subr.bf16.mxu1 %v3978_v48 }
 0x4d8   :  { %3507 = vmatmul.mubr.msk.f32.gmra.mrb[10].mxu1 %vm1106_vm5, %v1081_v51  ;;  %v2946_v51 = vld [vmem:[%s5541_s12 + $0x50] sm:$0xff] }
 0x4d9   :  { %3981 = vmatpush3.bf16.msra.mxu1 %v3978_v48 }
 0x5a7   :  { %v3505_v55 = vpop.f32.mrb[8].mxu1 }
 0x5a8   :  { %v4942_v56 = vadd.f32 %v3505_v55, %v1094_v53  ;;  %v1185_v57 = vpop.f32.mrb[9].mxu1  ;;  %v1261_v55 = vld [vmem:[%s5516_s14] sm:$0xff] }
 0x5a9   :  { %v4944_v58 = vadd.f32 %v1185_v57, %v1089_v52  ;;  %v2947_v52 = vld [vmem:[%s5541_s12 + $0x58] sm:$0xff]  ;;  %v1255_v57 = vld [vmem:[%s5515_s13 + $0x10] sm:$0xff] }
 0x5aa   :  { %v1208_v59 = vsel %vm1204_vm6, %v4942_v56, 0.0 }
 0x5ab   :  { %v3508_v61 = vpop.f32.mrb[10].mxu1  ;;  %1209 = vadd.xlane.f32.xlu0 %v1208_v59  ;;  %v1205_v62 = vsel %vm1204_vm6, %v4944_v58, 0.0 }
 0x5ac   :  { %v4950_v1 = vadd.f32 %v3508_v61, %v1104_v60  ;;  %v1195_v2 = vpop.f32.mrb[11].mxu1  ;;  %1206 = vadd.xlane.f32.xlu1 %v1205_v62  ;;  %v1329_v60 = vld [vmem:[%s5541_s12 + $0x20] sm:$0xff]  ;;  %v1330_v61 = vld [vmem:[%s5541_s12 + $0x28] sm:$0xff] }
 0x5ad   :  { %v4952_v3 = vadd.f32 %v1195_v2, %v1099_v54  ;;  %v3996_v54 = vpack.c.bf16 %v2947_v52, %v2946_v51  ;;  %v3982_v2 = vpack.c.bf16 %v1330_v61, %v1329_v60  ;;  %v2961_v60 = vld [vmem:[%s5541_s12 + $0xa0] sm:$0xff]  ;;  %v2962_v61 = vld [vmem:[%s5541_s12 + $0xa8] sm:$0xff] }
 0x5ae   :  { %v1214_v4 = vsel %vm1204_vm6, %v4950_v1, 0.0 }
 0x5af   :  { %1215 = vadd.xlane.f32.xlu0 %v1214_v4  ;;  %v1211_v7 = vsel %vm1204_vm6, %v4952_v3, 0.0  ;;  %3997 = vmatprep.subr.bf16.mxu0 %v3996_v54  ;;  %v2948_v4 = vld [vmem:[%s5541_s12 + $0x60] sm:$0xff] }
 0x5b0   :  { %1212 = vadd.xlane.f32.xlu1 %v1211_v7  ;;  %v2949_v7 = vld [vmem:[%s5541_s12 + $0x68] sm:$0xff]  ;;  %3999 = vmatpush3.bf16.msra.mxu0 %v3996_v54  ;;  %v2960_v54 = vld [vmem:[%s5541_s12 + $0x98] sm:$0xff] }
 0x5b1   :  { %3983 = vmatprep.subr.bf16.mxu1 %v3982_v2 }
 0x5b2   :  { %3985 = vmatpush3.bf16.msra.mxu1 %v3982_v2  ;;  %v4018_v2 = vpack.c.bf16 %v2962_v61, %v2961_v60 }
 0x638   :  { %v1210_v9 = vpop.xlane.xlu0 %1209 }
 0x639   :  { %v4958_v6 = vmul.f32 0.01724138, %v1210_v9  ;;  %v1207_v10 = vpop.xlane.xlu1 %1206 }
 0x63a   :  { %v4960_v11 = vmul.f32 0.01724138, %v1207_v10 }
 0x63b   :  { %v1222_v12 = vsub.f32 %v4942_v56, %v4958_v6 }
 0x63c   :  { %v1221_v13 = vsub.f32 %v4944_v58, %v4960_v11  ;;  %v1216_v14 = vpop.xlane.xlu0 %1215 }
 0x63d   :  { %v4966_v15 = vmul.f32 0.01724138, %v1216_v14  ;;  %v1213_v16 = vpop.xlane.xlu1 %1212  ;;  %v1226_v17 = vmul.f32 %v1222_v12, %v1222_v12  ;;  %v4000_v12 = vpack.c.bf16 %v2949_v7, %v2948_v4  ;;  %v1262_v14 = vld [vmem:[%s5516_s14 + $0x8] sm:$0xff]  ;;  %v2963_v7 = vld [vmem:[%s5541_s12 + $0xb0] sm:$0xff] }
 0x63e   :  { %v4968_v5 = vmul.f32 0.01724138, %v1213_v16  ;;  %v1225_v19 = vmul.f32 %v1221_v13, %v1221_v13  ;;  %v1263_v16 = vld [vmem:[%s5516_s14 + $0x10] sm:$0xff] }
 0x63f   :  { %v1224_v20 = vsub.f32 %v4950_v1, %v4966_v15  ;;  %v1232_v21 = vsel %vm1204_vm6, %v1226_v17, 0.0  ;;  %v1256_v17 = vld [vmem:[%s5515_s13 + $0x18] sm:$0xff]  ;;  %4001 = vmatprep.subr.bf16.mxu0 %v4000_v12 }
 0x640   :  { %v1223_v22 = vsub.f32 %v4952_v3, %v4968_v5  ;;  %1233 = vadd.xlane.f32.xlu0 %v1232_v21  ;;  %v1229_v23 = vsel %vm1204_vm6, %v1225_v19, 0.0  ;;  %v1331_v19 = vld [vmem:[%s5541_s12 + $0x30] sm:$0xff]  ;;  %4003 = vmatpush3.bf16.msra.mxu0 %v4000_v12 }
 0x641   :  { %1230 = vadd.xlane.f32.xlu1 %v1229_v23  ;;  %v1228_v24 = vmul.f32 %v1224_v20, %v1224_v20  ;;  %v1332_v20 = vld [vmem:[%s5541_s12 + $0x38] sm:$0x3] }
 0x642   :  { %v1227_v25 = vmul.f32 %v1223_v22, %v1223_v22  ;;  %v3986_v21 = vpack.c.bf16 %v1332_v20, %v1331_v19  ;;  %v2950_v22 = vld [vmem:[%s5541_s12 + $0x70] sm:$0xff]  ;;  %v1639_v20 = vld [vmem:[%s5544_s11 + $0x18] sm:$0xf] }
 0x643   :  { %v1238_v26 = vsel %vm1204_vm6, %v1228_v24, 0.0  ;;  %v1638_v19 = vld [vmem:[%s5544_s11 + $0x10] sm:$0xff] }
 0x644   :  { %1239 = vadd.xlane.f32.xlu0 %v1238_v26  ;;  %v1235_v8 = vsel %vm1204_vm6, %v1227_v25, 0.0  ;;  %3988 = vmatprep.subr.msk.bf16.mxu1 %vm5051_vm8, %v3986_v21  ;;  %v2976_v26 = vld [vmem:[%s5544_s11 + $0x28] sm:$0xff] }
 0x645   :  { %1236 = vadd.xlane.f32.xlu1 %v1235_v8  ;;  %3991 = vmatpush3.bf16.msk.msra.mxu1 %vm5051_vm8, %v3986_v21  ;;  %v2986_v21 = vld [vmem:[%s5544_s11 + $0x50] sm:$0xff] }
 0x646   :  { %4011 = vmatprep.subr.bf16.mxu1 %v4010_v30 }
 0x6cd   :  { %v1234_v33 = vpop.xlane.xlu0 %1233 }
 0x6ce   :  { %v1242_v34 = vmul.f32 0.01724138, %v1234_v33  ;;  %v1231_v35 = vpop.xlane.xlu1 %1230  ;;  %v1942_v33 = vld [vmem:[%s5518_s16 + $0x10] sm:$0xff] }
 0x6cf   :  { %v1241_v36 = vmul.f32 0.01724138, %v1231_v35  ;;  %v1944_v35 = vld [vmem:[%s5518_s16 + $0x20] sm:$0xff] }
 0x6d0   :  { %v1246_v63 = vadd.f32 1e-05, %v1242_v34 }
 0x6d1   :  { %v1245_v37 = vadd.f32 1e-05, %v1241_v36  ;;  %v1240_v0 = vpop.xlane.xlu0 %1239  ;;  %v1943_v36 = vld [vmem:[%s5518_s16 + $0x18] sm:$0xff] }
 0x6d2   :  { %4124 = vrsqrt.f32 %v1246_v63  ;;  %v1244_v38 = vmul.f32 0.01724138, %v1240_v0  ;;  %v1237_v39 = vpop.xlane.xlu1 %1236  ;;  %v1946_v63 = vld [vmem:[%s5518_s16 + $0x30] sm:$0xff]  ;;  %v1948_v0 = vld [vmem:[%s5518_s16 + $0x40] sm:$0xff] }
 0x6d3   :  { %4126 = vrsqrt.f32 %v1245_v37  ;;  %v1243_v41 = vmul.f32 0.01724138, %v1237_v39  ;;  %v1945_v37 = vld [vmem:[%s5518_s16 + $0x28] sm:$0xff]  ;;  %v1950_v39 = vld [vmem:[%s5518_s16 + $0x50] sm:$0xff] }
 0x6d4   :  { %v1248_v42 = vadd.f32 1e-05, %v1244_v38  ;;  %v1947_v38 = vld [vmem:[%s5518_s16 + $0x38] sm:$0xff] }
 0x6d5   :  { %v1247_v43 = vadd.f32 1e-05, %v1243_v41  ;;  %v1949_v41 = vld [vmem:[%s5518_s16 + $0x48] sm:$0xff] }
 0x6d7   :  { %4128 = vrsqrt.f32 %v1247_v43 }
 0x6d8   :  { %4130 = vrsqrt.f32 %v1248_v42  ;;  %v1951_v42 = vld [vmem:[%s5518_s16 + $0x58] sm:$0xff] }
 0x6dc   :  { %v4125_v46 = vpop.eup %4124 }
 0x6dd   :  { %v4127_v49 = vpop.eup %4126  ;;  %v1258_v50 = vmul.f32 %v4125_v46, %v1254_v44 }
 0x6de   :  { %v1257_v53 = vmul.f32 %v4127_v49, %v1253_v45 }
 0x6df   :  { %1280 = vperm.xlu0 %4119, %v1258_v50  }
 0x6e0   :  { %1275 = vperm.xlu1 %4118, %v1257_v53   ;;  %v1265_v59 = vmul.f32 %v1257_v53, %v4960_v11  ;;  %v1266_v11 = vmul.f32 %v1258_v50, %v4958_v6  ;;  %v2959_v53 = vld [vmem:[%s5541_s12 + $0x90] sm:$0xff] }
 0x6e1   :  { %v4129_v62 = vpop.eup %4128 }
 0x6e2   :  { %v1269_v9 = vsub.f32 %v1261_v55, %v1265_v59  ;;  %v1259_v10 = vmul.f32 %v4129_v62, %v1255_v57  ;;  %v4131_v13 = vpop.eup %4130  ;;  %v1270_v23 = vsub.f32 %v1262_v14, %v1266_v11  ;;  %v2984_v14 = vld [vmem:[%s5544_s11 + $0x40] sm:$0xff] }
 0x6e3   :  { %v1260_v25 = vmul.f32 %v4131_v13, %v1256_v17  ;;  %v1637_v13 = vld [vmem:[%s5544_s11 + $0x8] sm:$0xff] }
 0x6e4   :  { %1299 = vperm.xlu1 %4118, %v1269_v9   ;;  %1285 = vperm.xlu0 %4119, %v1259_v10   ;;  %v1267_v6 = vmul.f32 %v1259_v10, %v4968_v5  ;;  %v2951_v5 = vld [vmem:[%s5541_s12 + $0x78] sm:$0x3]  ;;  %v2985_v17 = vld [vmem:[%s5544_s11 + $0x48] sm:$0xff] }
 0x6e5   :  { %v4004_v8 = vpack.c.bf16 %v2951_v5, %v2950_v22  ;;  %v1268_v31 = vmul.f32 %v1260_v25, %v4966_v15  ;;  %v1941_v15 = vld [vmem:[%s5518_s16 + $0x8] sm:$0xff]  ;;  %v2964_v9 = vld [vmem:[%s5541_s12 + $0xb8] sm:$0x3]  ;;  %v4032_v22 = vpack.c.bf16 %v1639_v20, %v1638_v19  ;;  %s2797_s12 = sshll.u32 %s4191_s27, 4  ;;  %s2798_s12 = int_to_ptr.vmem [resolvable:$true] %s2797_s12 }
 0x6e6   :  { %v1271_v24 = vsub.f32 %v1263_v16, %v1267_v6  ;;  %v4022_v12 = vpack.c.bf16 %v2964_v9, %v2963_v7  ;;  %v4048_v6 = vpack.c.bf16 %v2985_v17, %v2984_v14  ;;  %v2987_v5 = vld [vmem:[%s5544_s11 + $0x58] sm:$0xf]  ;;  %v1929_v7 = vld [vmem:[%s5517_s15 + $0x8] sm:$0xff]  ;;  %v1930_v9 = vld [vmem:[%s5517_s15 + $0x10] sm:$0xff]  ;;  %s4164_s28 = scalar_lea.vmem %s2798_s12, 32  ;;  %p4165_p1 = scmp.lt.s32.totalorder %s2798_s12, %s2798_s12 }
 0x6e7   :  { %4006 = vmatprep.subr.msk.bf16.mxu0 %vm5051_vm8, %v4004_v8  ;;  %v1272_v34 = vsub.f32 %v1264_v32, %v1268_v31  ;;  %v1936_v14 = vld [vmem:[%s5517_s15 + $0x40] sm:$0xff]  ;;  %v1938_v17 = vld [vmem:[%s5517_s15 + $0x50] sm:$0xff] }
 0x6e8   :  { %1304 = vperm.xlu1 %4118, %v1270_v23   ;;  %1309 = vperm.xlu0 %4119, %v1271_v24   ;;  %v4052_v24 = vpack.c.bf16 %v2987_v5, %v2986_v21 }
 0x6e9   :  { %4009 = vmatpush3.bf16.msk.msra.mxu0 %vm5051_vm8, %v4004_v8 }
 0x6ec   :  { %1290 = vperm.xlu1 %4118, %v1260_v25   ;;  %1954 = vperm.xlu0 %4119, %v1940_v29   ;;  %v2975_v25 = vld [vmem:[%s5544_s11 + $0x20] sm:$0xff] }
 0x6ed   :  { %v4038_v8 = vpack.c.bf16 %v2976_v26, %v2975_v25 }
 0x6f0   :  { %1314 = vperm.xlu1 %4118, %v1272_v34   ;;  %1964 = vperm.xlu0 %4119, %v1942_v33  }
 0x6f4   :  { %1959 = vperm.xlu1 %4118, %v1941_v15   ;;  %1974 = vperm.xlu0 %4119, %v1944_v35  }
 0x6f8   :  { %1969 = vperm.xlu1 %4118, %v1943_v36   ;;  %1984 = vperm.xlu0 %4119, %v1946_v63  }
 0x6fc   :  { %1979 = vperm.xlu1 %4118, %v1945_v37   ;;  %1994 = vperm.xlu0 %4119, %v1948_v0   ;;  %v2977_v0 = vld [vmem:[%s5544_s11 + $0x30] sm:$0xff] }
 0x700   :  { %1989 = vperm.xlu1 %4118, %v1947_v38   ;;  %2004 = vperm.xlu0 %4119, %v1950_v39   ;;  %v2978_v38 = vld [vmem:[%s5544_s11 + $0x38] sm:$0xf] }
 0x704   :  { %1999 = vperm.xlu1 %4118, %v1949_v41  }
 0x708   :  { %2009 = vperm.xlu1 %4118, %v1951_v42  }
 0x75e   :  { %v1281_v43 = vpop.permute.xlu0 %1280 }
 0x75f   :  { %v1276_v44 = vpop.permute.xlu1 %1275  ;;  %v1294_v49 = vmul.f32 %v1281_v43, %v4942_v56  ;;  %v4042_v43 = vpack.c.bf16 %v2978_v38, %v2977_v0 }
 0x760   :  { %v1293_v45 = vmul.f32 %v1276_v44, %v4944_v58 }
 0x763   :  { %v1286_v46 = vpop.permute.xlu0 %1285  ;;  %v1300_v18 = vpop.permute.xlu1 %1299 }
 0x764   :  { %v1317_v47 = vadd.f32 %v1300_v18, %v1293_v45  ;;  %v1295_v50 = vmul.f32 %v1286_v46, %v4952_v3  ;;  %v4014_v3 = vpack.c.bf16 %v2960_v54, %v2959_v53 }
 0x766   :  { %v1321_v48 = vmax.f32 %v1317_v47, 0.0  ;;  %v1928_v47 = vld [vmem:[%s5517_s15] sm:$0xff] }
 0x767   :  { %v1310_v51 = vpop.permute.xlu0 %1309  ;;  %v1305_v52 = vpop.permute.xlu1 %1304 }
 0x768   :  { %v1319_v55 = vadd.f32 %v1310_v51, %v1295_v50  ;;  %v1318_v58 = vadd.f32 %v1305_v52, %v1294_v49  ;;  %3525 = vmatprep.mubr.msk.f32.mxu1 %vm1204_vm6, %v1321_v48  ;;  %3547 = vmatprep.mubr.msk.f32.mxu0 %vm1204_vm6, %v1321_v48 }
 0x76a   :  { %v1323_v56 = vmax.f32 %v1319_v55, 0.0  ;;  %v1322_v57 = vmax.f32 %v1318_v58, 0.0 }
 0x76b   :  { %v1291_v59 = vpop.permute.xlu1 %1290  ;;  %v1955_v19 = vpop.permute.xlu0 %1954 }
 0x76c   :  { %3526 = vmatmul.mubr.msk.f32.vlgmr.msra.gmra.mrb[12].mxu1 %vm1204_vm6, %v1322_v57  ;;  %3548 = vmatmul.mubr.msk.f32.vlgmr.msra.gmra.mrb[10].mxu0 %vm1204_vm6, %v1322_v57  ;;  %v1296_v62 = vmul.f32 %v1291_v59, %v4950_v1  ;;  %v1636_v1 = vld [vmem:[%s5544_s11] sm:$0xff] }
 0x76d   :  { %4013 = vmatpush3.bf16.msra.mxu1 %v4010_v30  ;;  %3528 = vmatprep.mubr.msk.f32.mxu1 %vm1204_vm6, %v1323_v56  ;;  %v4028_v16 = vpack.c.bf16 %v1637_v13, %v1636_v1  ;;  %v1934_v1 = vld [vmem:[%s5517_s15 + $0x30] sm:$0xff]  ;;  %v1935_v13 = vld [vmem:[%s5517_s15 + $0x38] sm:$0xff] }
 0x76e   :  { %3550 = vmatprep.mubr.msk.f32.mxu0 %vm1204_vm6, %v1323_v56  ;;  %4015 = vmatprep.subr.bf16.mxu1 %v4014_v3 }
 0x76f   :  { %v1315_v4 = vpop.permute.xlu1 %1314  ;;  %4029 = vmatprep.subr.bf16.mxu0 %v4028_v16  ;;  %v1965_v21 = vpop.permute.xlu0 %1964 }
 0x770   :  { %v1320_v10 = vadd.f32 %v1315_v4, %v1296_v62  ;;  %4031 = vmatpush3.bf16.msra.mxu0 %v4028_v16  ;;  %v1937_v16 = vld [vmem:[%s5517_s15 + $0x48] sm:$0xff] }
 0x771   :  { %4017 = vmatpush3.bf16.msra.mxu1 %v4014_v3  ;;  %4034 = vmatprep.subr.msk.bf16.mxu0 %vm5172_vm10, %v4032_v22 }
 0x772   :  { %v1324_v11 = vmax.f32 %v1320_v10, 0.0  ;;  %4019 = vmatprep.subr.bf16.mxu1 %v4018_v2  ;;  %v1931_v10 = vld [vmem:[%s5517_s15 + $0x18] sm:$0xff] }
 0x773   :  { %v1960_v20 = vpop.permute.xlu1 %1959  ;;  %v1975_v26 = vpop.permute.xlu0 %1974 }
 0x774   :  { %3529 = vmatmul.mubr.msk.f32.gmra.mrb[14].mxu1 %vm1204_vm6, %v1324_v11  ;;  %3551 = vmatmul.mubr.msk.f32.gmra.mrb[12].mxu0 %vm1204_vm6, %v1324_v11 }
 0x775   :  { %4021 = vmatpush3.bf16.msra.mxu1 %v4018_v2  ;;  %3569 = vmatprep.mubr.msk.f32.mxu1 %vm1204_vm6, %v1321_v48 }
 0x776   :  { %4024 = vmatprep.subr.msk.bf16.mxu1 %vm5051_vm8, %v4022_v12  ;;  %4037 = vmatpush3.bf16.msk.msra.mxu0 %vm5172_vm10, %v4032_v22 }
 0x777   :  { %4039 = vmatprep.subr.bf16.mxu0 %v4038_v8  ;;  %v1970_v22 = vpop.permute.xlu1 %1969 }
 0x779   :  { %4027 = vmatpush3.bf16.msk.msra.mxu1 %vm5051_vm8, %v4022_v12  ;;  %v1933_v12 = vld [vmem:[%s5517_s15 + $0x28] sm:$0xff] }
 0x77a   :  { %4049 = vmatprep.subr.bf16.mxu1 %v4048_v6 }
 0x77c   :  { %3570 = vmatmul.mubr.msk.f32.vlgmr.msra.gmra.mrb[16].mxu1 %vm1204_vm6, %v1322_v57 }
 0x77d   :  { %3572 = vmatprep.mubr.msk.f32.mxu1 %vm1204_vm6, %v1323_v56  ;;  %4051 = vmatpush3.bf16.msra.mxu1 %v4048_v6  ;;  %v1939_v6 = vld [vmem:[%s5517_s15 + $0x58] sm:$0xff] }
 0x77e   :  { %4054 = vmatprep.subr.msk.bf16.mxu1 %vm5172_vm10, %v4052_v24 }
 0x780   :  { %3573 = vmatmul.mubr.msk.f32.gmra.mrb[18].mxu1 %vm1204_vm6, %v1324_v11  ;;  %v1932_v11 = vld [vmem:[%s5517_s15 + $0x20] sm:$0xff] }
 0x781   :  { %4057 = vmatpush3.bf16.msk.msra.mxu1 %vm5172_vm10, %v4052_v24 }
 0x83f   :  { %v3527_v27 = vpop.f32.mrb[12].mxu1  ;;  %v3549_v28 = vpop.f32.mrb[10].mxu0 }
 0x840   :  { %v1532_v29 = vmax.f32 %v3527_v27, %v3549_v28  ;;  %v1415_v30 = vpop.f32.mrb[13].mxu1  ;;  %v1512_v31 = vpop.f32.mrb[11].mxu0 }
 0x841   :  { %v1531_v32 = vmax.f32 %v1415_v30, %v1512_v31 }
 0x847   :  { %v3530_v33 = vpop.f32.mrb[14].mxu1  ;;  %v3552_v34 = vpop.f32.mrb[12].mxu0 }
 0x848   :  { %v1534_v15 = vmax.f32 %v3530_v33, %v3552_v34  ;;  %v1425_v35 = vpop.f32.mrb[15].mxu1  ;;  %v1522_v36 = vpop.f32.mrb[13].mxu0 }
 0x849   :  { %v1533_v63 = vmax.f32 %v1425_v35, %v1522_v36 }
 0x84f   :  { %v3571_v37 = vpop.f32.mrb[16].mxu1 }
 0x850   :  { %v1633_v39 = vmax.f32 %v1532_v29, %v3571_v37  ;;  %v1613_v41 = vpop.f32.mrb[17].mxu1  ;;  %v1980_v29 = vpop.permute.xlu1 %1979 }
 0x851   :  { %v1632_v42 = vmax.f32 %v1531_v32, %v1613_v41 }
 0x853   :  { %v3574_v44 = vpop.f32.mrb[18].mxu1  ;;  %3583 = vmatprep.mubr.msk.f32.mxu0 %vm1640_vm11, %v1632_v42  ;;  %3611 = vmatprep.mubr.msk.f32.mxu1 %vm1640_vm11, %v1632_v42 }
 0x854   :  { %v1635_v45 = vmax.f32 %v1534_v15, %v3574_v44  ;;  %v1623_v46 = vpop.f32.mrb[19].mxu1  ;;  %3584 = vmatmul.mubr.msk.f32.vlgmr.msra.gmra.mrb[14].mxu0 %vm1640_vm11, %v1633_v39  ;;  %3612 = vmatmul.mubr.msk.f32.vlgmr.msra.gmra.mrb[20].mxu1 %vm1640_vm11, %v1633_v39  ;;  %v1985_v15 = vpop.permute.xlu0 %1984 }
 0x855   :  { %v1634_v18 = vmax.f32 %v1533_v63, %v1623_v46  ;;  %4041 = vmatpush3.bf16.msra.mxu0 %v4038_v8  ;;  %v1990_v63 = vpop.permute.xlu1 %1989 }
 0x856   :  { %4044 = vmatprep.subr.msk.bf16.mxu0 %vm5172_vm10, %v4042_v43 }
 0x857   :  { %3586 = vmatprep.mubr.msk.f32.mxu0 %vm1640_vm11, %v1634_v18  ;;  %3614 = vmatprep.mubr.msk.f32.mxu1 %vm1640_vm11, %v1634_v18 }
 0x858   :  { %3587 = vmatmul.mubr.msk.f32.gmra.mrb[16].mxu0 %vm1640_vm11, %v1635_v45  ;;  %3615 = vmatmul.mubr.msk.f32.gmra.mrb[22].mxu1 %vm1640_vm11, %v1635_v45 }
 0x859   :  { %4047 = vmatpush3.bf16.msk.msra.mxu0 %vm5172_vm10, %v4042_v43  ;;  %3597 = vmatprep.mubr.msk.f32.mxu0 %vm1640_vm11, %v1632_v42  ;;  %v1995_v43 = vpop.permute.xlu0 %1994 }
 0x85c   :  { %3598 = vmatmul.mubr.msk.f32.vlgmr.msra.gmra.mrb[18].mxu0 %vm1640_vm11, %v1633_v39 }
 0x85d   :  { %3600 = vmatprep.mubr.msk.f32.mxu0 %vm1640_vm11, %v1634_v18 }
 0x860   :  { %3601 = vmatmul.mubr.msk.f32.gmra.mrb[20].mxu0 %vm1640_vm11, %v1635_v45 }
 0x861   :  { %3641 = vmatprep.mubr.msk.f32.mxu0 %vm2012_vm12, %v1928_v47  ;;  %v2000_v47 = vpop.permute.xlu1 %1999 }
 0x927   :  { %v3585_v49 = vpop.f32.mrb[14].mxu0  ;;  %v3613_v50 = vpop.f32.mrb[20].mxu1 }
 0x928   :  { %v1723_v48 = vpop.f32.mrb[15].mxu0  ;;  %v1909_v51 = vpop.f32.mrb[21].mxu1 }
 0x929   :  { %v4058_v52 = vpack.c.bf16 %v3585_v49, %v1723_v48  ;;  %v4074_v53 = vpack.c.bf16 %v3613_v50, %v1909_v51 }
 0x92b   :  { %v3588_v54 = vpop.f32.mrb[16].mxu0  ;;  %v3616_v55 = vpop.f32.mrb[22].mxu1  ;;  %4059 = vmatprep.subr.bf16.mxu0 %v4058_v52 }
 0x92c   :  { %v1733_v58 = vpop.f32.mrb[17].mxu0  ;;  %v1919_v56 = vpop.f32.mrb[23].mxu1  ;;  %4061 = vmatpush3.bf16.msra.mxu0 %v4058_v52 }
 0x92d   :  { %v4062_v57 = vpack.c.bf16 %v3588_v54, %v1733_v58  ;;  %v4078_v3 = vpack.c.bf16 %v3616_v55, %v1919_v56  ;;  %v2005_v54 = vpop.permute.xlu0 %2004  ;;  %v2010_v56 = vpop.permute.xlu1 %2009 }
 0x92f   :  { %v3599_v59 = vpop.f32.mrb[18].mxu0  ;;  %4063 = vmatprep.subr.bf16.mxu0 %v4062_v57 }
 0x930   :  { %v1816_v60 = vpop.f32.mrb[19].mxu0  ;;  %4065 = vmatpush3.bf16.msra.mxu0 %v4062_v57 }
 0x931   :  { %v4066_v61 = vpack.c.bf16 %v3599_v59, %v1816_v60 }
 0x933   :  { %v3602_v62 = vpop.f32.mrb[20].mxu0  ;;  %4067 = vmatprep.subr.bf16.mxu0 %v4066_v61 }
 0x934   :  { %v1826_v2 = vpop.f32.mrb[21].mxu0  ;;  %4069 = vmatpush3.bf16.msra.mxu0 %v4066_v61 }
 0x935   :  { %v4070_v4 = vpack.c.bf16 %v3602_v62, %v1826_v2 }
 0x937   :  { %4071 = vmatprep.subr.bf16.mxu0 %v4070_v4 }
 0x938   :  { %4073 = vmatpush3.bf16.msra.mxu0 %v4070_v4 }
 0x939   :  { %4075 = vmatprep.subr.bf16.mxu0 %v4074_v53 }
 0x93c   :  { %4077 = vmatpush3.bf16.msra.mxu0 %v4074_v53 }
 0x93d   :  { %4079 = vmatprep.subr.bf16.mxu0 %v4078_v3 }
 0x940   :  { %4081 = vmatpush3.bf16.msra.mxu0 %v4078_v3 }
 0x943   :  { %3642 = vmatmul.mubr.msk.f32.vlgmr.msra.gmra.mrb[22].mxu0 %vm2012_vm12, %v1929_v7 }
 0x944   :  { %3644 = vmatprep.mubr.msk.f32.mxu0 %vm2012_vm12, %v1930_v9 }
 0x947   :  { %3645 = vmatmul.mubr.msk.f32.gmra.mrb[24].mxu0 %vm2012_vm12, %v1931_v10 }
 0x948   :  { %3647 = vmatprep.mubr.msk.f32.mxu0 %vm2012_vm12, %v1932_v11 }
 0x94b   :  { %3648 = vmatmul.mubr.msk.f32.gmra.mrb[26].mxu0 %vm2012_vm12, %v1933_v12 }
 0x94c   :  { %3650 = vmatprep.mubr.msk.f32.mxu0 %vm2012_vm12, %v1934_v1 }
 0x94f   :  { %3651 = vmatmul.mubr.msk.f32.gmra.mrb[28].mxu0 %vm2012_vm12, %v1935_v13 }
 0x950   :  { %3653 = vmatprep.mubr.msk.f32.mxu0 %vm2012_vm12, %v1936_v14 }
 0x953   :  { %3654 = vmatmul.mubr.msk.f32.gmra.mrb[30].mxu0 %vm2012_vm12, %v1937_v16 }
 0x954   :  { %3656 = vmatprep.mubr.msk.f32.mxu0 %vm2012_vm12, %v1938_v17 }
 0x957   :  { %3657 = vmatmul.mubr.msk.f32.gmra.mrb[32].mxu0 %vm2012_vm12, %v1939_v6 }
 0xa16   :  { %v3643_v5 = vpop.f32.mrb[22].mxu0 }
 0xa17   :  { %v5260_v23 = vadd.f32 %v3643_v5, %v1960_v20  ;;  %v2115_v24 = vpop.f32.mrb[23].mxu0 }
 0xa18   :  { %v5262_v25 = vadd.f32 %v2115_v24, %v1955_v19 }
 0xa19   :  { %v2178_v8 = vsel %vm2174_vm13, %v5260_v23, 0.0 }
 0xa1a   :  { %v3646_v27 = vpop.f32.mrb[24].mxu0  ;;  %2179 = vadd.xlane.f32.xlu1 %v2178_v8  ;;  %v2175_v28 = vsel %vm2174_vm13, %v5262_v25, 0.0 }
 0xa1b   :  { %v2125_v30 = vpop.f32.mrb[25].mxu0  ;;  %2176 = vadd.xlane.f32.xlu0 %v2175_v28  ;;  %v5270_v32 = vadd.f32 %v3646_v27, %v1970_v22 }
 0xa1c   :  { %v5268_v31 = vadd.f32 %v2125_v30, %v1965_v21 }
 0xa1d   :  { %v2184_v39 = vsel %vm2174_vm13, %v5270_v32, 0.0 }
 0xa1e   :  { %v3649_v33 = vpop.f32.mrb[26].mxu0  ;;  %v2181_v34 = vsel %vm2174_vm13, %v5268_v31, 0.0 }
 0xa1f   :  { %v2135_v35 = vpop.f32.mrb[27].mxu0  ;;  %2182 = vadd.xlane.f32.xlu0 %v2181_v34  ;;  %v5276_v37 = vadd.f32 %v3649_v33, %v1980_v29 }
 0xa20   :  { %v5274_v36 = vadd.f32 %v2135_v35, %v1975_v26 }
 0xa21   :  { %v2190_v18 = vsel %vm2174_vm13, %v5276_v37, 0.0 }
 0xa22   :  { %v3652_v0 = vpop.f32.mrb[28].mxu0  ;;  %v2187_v38 = vsel %vm2174_vm13, %v5274_v36, 0.0 }
 0xa23   :  { %v2145_v41 = vpop.f32.mrb[29].mxu0  ;;  %2188 = vadd.xlane.f32.xlu1 %v2187_v38  ;;  %2185 = vadd.xlane.f32.xlu0 %v2184_v39  ;;  %v5284_v44 = vadd.f32 %v3652_v0, %v1990_v63 }
 0xa24   :  { %v5282_v42 = vadd.f32 %v2145_v41, %v1985_v15 }
 0xa25   :  { %v2196_v53 = vsel %vm2174_vm13, %v5284_v44, 0.0 }
 0xa26   :  { %v3655_v45 = vpop.f32.mrb[30].mxu0  ;;  %v2193_v46 = vsel %vm2174_vm13, %v5282_v42, 0.0 }
 0xa27   :  { %v2155_v49 = vpop.f32.mrb[31].mxu0  ;;  %2194 = vadd.xlane.f32.xlu1 %v2193_v46  ;;  %2191 = vadd.xlane.f32.xlu0 %v2190_v18  ;;  %v5292_v48 = vadd.f32 %v3655_v45, %v2000_v47 }
 0xa28   :  { %v5290_v50 = vadd.f32 %v2155_v49, %v1995_v43 }
 0xa29   :  { %v2202_v59 = vsel %vm2174_vm13, %v5292_v48, 0.0 }
 0xa2a   :  { %v3658_v51 = vpop.f32.mrb[32].mxu0  ;;  %v2199_v52 = vsel %vm2174_vm13, %v5290_v50, 0.0 }
 0xa2b   :  { %v2165_v55 = vpop.f32.mrb[33].mxu0  ;;  %2200 = vadd.xlane.f32.xlu1 %v2199_v52  ;;  %2197 = vadd.xlane.f32.xlu0 %v2196_v53  ;;  %v5300_v57 = vadd.f32 %v3658_v51, %v2010_v56 }
 0xa2c   :  { %v5298_v58 = vadd.f32 %v2165_v55, %v2005_v54 }
 0xa2d   :  { %v2208_v60 = vsel %vm2174_vm13, %v5300_v57, 0.0 }
 0xa2e   :  { %v2205_v3 = vsel %vm2174_vm13, %v5298_v58, 0.0 }
 0xa2f   :  { %2206 = vadd.xlane.f32.xlu1 %v2205_v3  ;;  %2203 = vadd.xlane.f32.xlu0 %v2202_v59 }
 0xa33   :  { %2209 = vadd.xlane.f32.xlu0 %v2208_v60 }
 0xaa7   :  { %v2180_v61 = vpop.xlane.xlu1 %2179 }
 0xaa8   :  { %v5308_v62 = vmul.f32 0.041666668, %v2180_v61  ;;  %v2177_v2 = vpop.xlane.xlu0 %2176 }
 0xaa9   :  { %v5310_v4 = vmul.f32 0.041666668, %v2177_v2 }
 0xaaa   :  { %v2224_v7 = vsub.f32 %v5260_v23, %v5308_v62 }
 0xaab   :  { %v2223_v9 = vsub.f32 %v5262_v25, %v5310_v4 }
 0xaac   :  { %v2183_v10 = vpop.xlane.xlu0 %2182  ;;  %v2236_v11 = vmul.f32 %v2224_v7, %v2224_v7 }
 0xaad   :  { %v5316_v12 = vmul.f32 0.041666668, %v2183_v10  ;;  %v2235_v1 = vmul.f32 %v2223_v9, %v2223_v9 }
 0xaae   :  { %v2250_v13 = vsel %vm2174_vm13, %v2236_v11, 0.0 }
 0xaaf   :  { %v2225_v14 = vsub.f32 %v5268_v31, %v5316_v12  ;;  %2251 = vadd.xlane.f32.xlu0 %v2250_v13  ;;  %v2247_v16 = vsel %vm2174_vm13, %v2235_v1, 0.0 }
 0xab0   :  { %2248 = vadd.xlane.f32.xlu1 %v2247_v16  ;;  %v2186_v17 = vpop.xlane.xlu0 %2185  ;;  %v2189_v6 = vpop.xlane.xlu1 %2188 }
 0xab1   :  { %v5322_v19 = vmul.f32 0.041666668, %v2186_v17  ;;  %v5324_v20 = vmul.f32 0.041666668, %v2189_v6  ;;  %v2237_v21 = vmul.f32 %v2225_v14, %v2225_v14 }
 0xab3   :  { %v2226_v22 = vsub.f32 %v5270_v32, %v5322_v19  ;;  %v2227_v5 = vsub.f32 %v5274_v36, %v5324_v20  ;;  %v2253_v24 = vsel %vm2174_vm13, %v2237_v21, 0.0 }
 0xab4   :  { %2254 = vadd.xlane.f32.xlu1 %v2253_v24  ;;  %v2192_v26 = vpop.xlane.xlu0 %2191  ;;  %v2195_v8 = vpop.xlane.xlu1 %2194 }
 0xab5   :  { %v5331_v27 = vmul.f32 0.041666668, %v2192_v26  ;;  %v5333_v28 = vmul.f32 0.041666668, %v2195_v8  ;;  %v2238_v29 = vmul.f32 %v2226_v22, %v2226_v22  ;;  %v2239_v30 = vmul.f32 %v2227_v5, %v2227_v5 }
 0xab7   :  { %v2228_v33 = vsub.f32 %v5276_v37, %v5331_v27  ;;  %v2229_v34 = vsub.f32 %v5282_v42, %v5333_v28  ;;  %v2256_v15 = vsel %vm2174_vm13, %v2238_v29, 0.0  ;;  %v2259_v35 = vsel %vm2174_vm13, %v2239_v30, 0.0 }
 0xab8   :  { %v2198_v63 = vpop.xlane.xlu0 %2197  ;;  %2257 = vadd.xlane.f32.xlu0 %v2256_v15  ;;  %2260 = vadd.xlane.f32.xlu1 %v2259_v35  ;;  %v2201_v0 = vpop.xlane.xlu1 %2200 }
 0xab9   :  { %v5341_v38 = vmul.f32 0.041666668, %v2198_v63  ;;  %v5343_v39 = vmul.f32 0.041666668, %v2201_v0  ;;  %v2240_v41 = vmul.f32 %v2228_v33, %v2228_v33  ;;  %v2241_v43 = vmul.f32 %v2229_v34, %v2229_v34 }
 0xabb   :  { %v2230_v45 = vsub.f32 %v5284_v44, %v5341_v38  ;;  %v2231_v46 = vsub.f32 %v5290_v50, %v5343_v39  ;;  %v2262_v18 = vsel %vm2174_vm13, %v2240_v41, 0.0  ;;  %v2265_v47 = vsel %vm2174_vm13, %v2241_v43, 0.0  ;;  %v2320_v41 = vld [vmem:[%s5519_s17 + $0x8] sm:$0xff] }
 0xabc   :  { %v2204_v49 = vpop.xlane.xlu0 %2203  ;;  %2263 = vadd.xlane.f32.xlu0 %v2262_v18  ;;  %2266 = vadd.xlane.f32.xlu1 %v2265_v47  ;;  %v2207_v51 = vpop.xlane.xlu1 %2206 }
 0xabd   :  { %v5351_v52 = vmul.f32 0.041666668, %v2204_v49  ;;  %v5353_v53 = vmul.f32 0.041666668, %v2207_v51  ;;  %v2242_v54 = vmul.f32 %v2230_v45, %v2230_v45  ;;  %v2243_v55 = vmul.f32 %v2231_v46, %v2231_v46  ;;  %v2319_v46 = vld [vmem:[%s5519_s17] sm:$0xff] }
 0xabf   :  { %v2232_v56 = vsub.f32 %v5292_v48, %v5351_v52  ;;  %v2233_v3 = vsub.f32 %v5298_v58, %v5353_v53  ;;  %v2268_v59 = vsel %vm2174_vm13, %v2242_v54, 0.0  ;;  %v2271_v60 = vsel %vm2174_vm13, %v2243_v55, 0.0 }
 0xac0   :  { %v2210_v61 = vpop.xlane.xlu0 %2209  ;;  %2269 = vadd.xlane.f32.xlu0 %v2268_v59  ;;  %2272 = vadd.xlane.f32.xlu1 %v2271_v60  ;;  %v2344_v59 = vld [vmem:[%s5520_s18 + $0x8] sm:$0xff] }
 0xac1   :  { %v5361_v2 = vmul.f32 0.041666668, %v2210_v61  ;;  %v2244_v7 = vmul.f32 %v2232_v56, %v2232_v56  ;;  %v2245_v9 = vmul.f32 %v2233_v3, %v2233_v3  ;;  %v2321_v61 = vld [vmem:[%s5519_s17 + $0x10] sm:$0xff] }
 0xac3   :  { %v2234_v10 = vsub.f32 %v5300_v57, %v5361_v2  ;;  %v2274_v11 = vsel %vm2174_vm13, %v2244_v7, 0.0  ;;  %v2277_v1 = vsel %vm2174_vm13, %v2245_v9, 0.0 }
 0xac4   :  { %2275 = vadd.xlane.f32.xlu0 %v2274_v11  ;;  %2278 = vadd.xlane.f32.xlu1 %v2277_v1 }
 0xac5   :  { %v2246_v13 = vmul.f32 %v2234_v10, %v2234_v10 }
 0xac7   :  { %v2280_v14 = vsel %vm2174_vm13, %v2246_v13, 0.0  ;;  %v2322_v13 = vld [vmem:[%s5519_s17 + $0x18] sm:$0xff] }
 0xac8   :  { %2281 = vadd.xlane.f32.xlu0 %v2280_v14 }
 0xb3c   :  { %v2252_v16 = vpop.xlane.xlu0 %2251 }
 0xb3d   :  { %v2284_v17 = vmul.f32 0.041666668, %v2252_v16  ;;  %v2249_v6 = vpop.xlane.xlu1 %2248 }
 0xb3e   :  { %v2283_v21 = vmul.f32 0.041666668, %v2249_v6 }
 0xb3f   :  { %v2296_v22 = vadd.f32 1e-05, %v2284_v17  ;;  %v2323_v17 = vld [vmem:[%s5519_s17 + $0x20] sm:$0xff] }
 0xb40   :  { %v2295_v5 = vadd.f32 1e-05, %v2283_v21 }
 0xb41   :  { %4132 = vrsqrt.f32 %v2296_v22  ;;  %v2255_v24 = vpop.xlane.xlu1 %2254 }
 0xb42   :  { %4134 = vrsqrt.f32 %v2295_v5  ;;  %v2285_v26 = vmul.f32 0.041666668, %v2255_v24 }
 0xb44   :  { %v2297_v8 = vadd.f32 1e-05, %v2285_v26 }
 0xb45   :  { %v2258_v29 = vpop.xlane.xlu0 %2257  ;;  %v2261_v30 = vpop.xlane.xlu1 %2260 }
 0xb46   :  { %4136 = vrsqrt.f32 %v2297_v8  ;;  %v2286_v33 = vmul.f32 0.041666668, %v2258_v29  ;;  %v2287_v34 = vmul.f32 0.041666668, %v2261_v30  ;;  %v2343_v30 = vld [vmem:[%s5520_s18] sm:$0xff] }
 0xb48   :  { %v2298_v15 = vadd.f32 1e-05, %v2286_v33  ;;  %v2299_v35 = vadd.f32 1e-05, %v2287_v34 }
 0xb49   :  { %v2264_v63 = vpop.xlane.xlu0 %2263  ;;  %v2267_v0 = vpop.xlane.xlu1 %2266 }
 0xb4a   :  { %4138 = vrsqrt.f32 %v2298_v15  ;;  %v2288_v43 = vmul.f32 0.041666668, %v2264_v63  ;;  %v2289_v45 = vmul.f32 0.041666668, %v2267_v0  ;;  %v2535_v15 = vld [vmem:[%s5508_s6] sm:$0xff]  ;;  %v2346_v0 = vld [vmem:[%s5520_s18 + $0x18] sm:$0xff] }
 0xb4b   :  { %v4133_v18 = vpop.eup %4132  ;;  %4140 = vrsqrt.f32 %v2299_v35  ;;  %v2536_v35 = vld [vmem:[%s5508_s6 + $0x8] sm:$0xff] }
 0xb4c   :  { %v4135_v47 = vpop.eup %4134  ;;  %v2300_v49 = vadd.f32 1e-05, %v2288_v43  ;;  %v2301_v51 = vadd.f32 1e-05, %v2289_v45  ;;  %v2332_v54 = vmul.f32 %v4133_v18, %v2320_v41  ;;  %v4082_v45 = vpack.c.bf16 %v2536_v35, %v2535_v15  ;;  %v2347_v18 = vld [vmem:[%s5520_s18 + $0x20] sm:$0xff]  ;;  %v2352_v35 = vld [vmem:[%s5520_s18 + $0x48] sm:$0xff] }
 0xb4d   :  { %v2270_v55 = vpop.xlane.xlu0 %2269  ;;  %v2273_v56 = vpop.xlane.xlu1 %2272  ;;  %v2331_v3 = vmul.f32 %v4135_v47, %v2319_v46  ;;  %v2324_v47 = vld [vmem:[%s5519_s17 + $0x28] sm:$0xff] }
 0xb4e   :  { %2386 = vperm.xlu0 %4119, %v2332_v54   ;;  %v2356_v60 = vmul.f32 %v2332_v54, %v5308_v62  ;;  %4142 = vrsqrt.f32 %v2300_v49  ;;  %v2290_v7 = vmul.f32 0.041666668, %v2270_v55  ;;  %v2291_v10 = vmul.f32 0.041666668, %v2273_v56  ;;  %v2345_v62 = vld [vmem:[%s5520_s18 + $0x10] sm:$0xff]  ;;  %4083 = vmatprep.subr.bf16.mxu1 %v4082_v45 }
 0xb4f   :  { %2381 = vperm.xlu1 %4118, %v2331_v3   ;;  %4144 = vrsqrt.f32 %v2301_v51  ;;  %v2355_v29 = vmul.f32 %v2331_v3, %v5310_v4  ;;  %v2325_v49 = vld [vmem:[%s5519_s17 + $0x30] sm:$0xff]  ;;  %4085 = vmatpush3.bf16.msra.mxu1 %v4082_v45  ;;  %v2354_v45 = vld [vmem:[%s5520_s18 + $0x58] sm:$0xff] }
 0xb50   :  { %v4137_v9 = vpop.eup %4136  ;;  %v2368_v11 = vsub.f32 %v2344_v59, %v2356_v60  ;;  %v2302_v14 = vadd.f32 1e-05, %v2290_v7  ;;  %v2303_v21 = vadd.f32 1e-05, %v2291_v10  ;;  %v2537_v59 = vld [vmem:[%s5508_s6 + $0x10] sm:$0xff]  ;;  %v2348_v7 = vld [vmem:[%s5520_s18 + $0x28] sm:$0xff] }
 0xb51   :  { %v2333_v1 = vmul.f32 %v4137_v9, %v2321_v61  ;;  %v2276_v22 = vpop.xlane.xlu0 %2275  ;;  %v2279_v24 = vpop.xlane.xlu1 %2278  ;;  %v2367_v63 = vsub.f32 %v2343_v30, %v2355_v29  ;;  %3663 = vmatprep.subr.mxu1 %v2537_v59  ;;  %v2329_v29 = vld [vmem:[%s5519_s17 + $0x50] sm:$0xff] }
 0xb52   :  { %4146 = vrsqrt.f32 %v2302_v14  ;;  %v2293_v34 = vmul.f32 0.041666668, %v2279_v24 }
 0xb53   :  { %2458 = vperm.xlu1 %4118, %v2368_v11   ;;  %2391 = vperm.xlu0 %4119, %v2333_v1   ;;  %v2357_v16 = vmul.f32 %v2333_v1, %v5316_v12  ;;  %v2292_v12 = vmul.f32 0.041666668, %v2276_v22  ;;  %4148 = vrsqrt.f32 %v2303_v21  ;;  %v2349_v1 = vld [vmem:[%s5520_s18 + $0x30] sm:$0xff]  ;;  %v2350_v21 = vld [vmem:[%s5520_s18 + $0x38] sm:$0xff] }
 0xb54   :  { %v4139_v6 = vpop.eup %4138  ;;  %3664 = vmatpush3.msra.mxu1 %v2537_v59 }
 0xb55   :  { %v4141_v5 = vpop.eup %4140  ;;  %v2334_v26 = vmul.f32 %v4139_v6, %v2322_v13  ;;  %v2369_v8 = vsub.f32 %v2345_v62, %v2357_v16  ;;  %v2304_v51 = vadd.f32 1e-05, %v2292_v12  ;;  %v2326_v13 = vld [vmem:[%s5519_s17 + $0x38] sm:$0xff]  ;;  %v2327_v62 = vld [vmem:[%s5519_s17 + $0x40] sm:$0xff] }
 0xb56   :  { %v2335_v33 = vmul.f32 %v4141_v5, %v2323_v17 }
 0xb57   :  { %2396 = vperm.xlu1 %4118, %v2334_v26   ;;  %2463 = vperm.xlu0 %4119, %v2369_v8   ;;  %v2358_v41 = vmul.f32 %v2334_v26, %v5322_v19  ;;  %v2305_v19 = vadd.f32 1e-05, %v2293_v34  ;;  %4150 = vrsqrt.f32 %v2304_v51  ;;  %v2351_v26 = vld [vmem:[%s5520_s18 + $0x40] sm:$0xff]  ;;  %v2328_v8 = vld [vmem:[%s5519_s17 + $0x48] sm:$0xff] }
 0xb58   :  { %v4143_v4 = vpop.eup %4142  ;;  %v2359_v43 = vmul.f32 %v2335_v33, %v5324_v20  ;;  %v2282_v20 = vpop.xlane.xlu0 %2281 }
 0xb59   :  { %v4145_v46 = vpop.eup %4144  ;;  %v2370_v54 = vsub.f32 %v2346_v0, %v2358_v41  ;;  %v2336_v56 = vmul.f32 %v4143_v4, %v2324_v47  ;;  %4152 = vrsqrt.f32 %v2305_v19  ;;  %v2294_v60 = vmul.f32 0.041666668, %v2282_v20  ;;  %v2353_v4 = vld [vmem:[%s5520_s18 + $0x50] sm:$0xff] }
 0xb5a   :  { %v2371_v55 = vsub.f32 %v2347_v18, %v2359_v43  ;;  %v2337_v3 = vmul.f32 %v4145_v46, %v2325_v49 }
 0xb5b   :  { %2453 = vperm.xlu1 %4118, %v2367_v63   ;;  %2401 = vperm.xlu0 %4119, %v2335_v33   ;;  %v2360_v9 = vmul.f32 %v2336_v56, %v5331_v27  ;;  %v2306_v14 = vadd.f32 1e-05, %v2294_v60  ;;  %v2330_v63 = vld [vmem:[%s5519_s17 + $0x58] sm:$0xff] }
 0xb5c   :  { %v4147_v61 = vpop.eup %4146  ;;  %v2361_v10 = vmul.f32 %v2337_v3, %v5333_v28 }
 0xb5d   :  { %v4149_v11 = vpop.eup %4148  ;;  %v2372_v27 = vsub.f32 %v2348_v7, %v2360_v9  ;;  %v2338_v28 = vmul.f32 %v4147_v61, %v2326_v13  ;;  %4154 = vrsqrt.f32 %v2306_v14 }
 0xb5e   :  { %v2373_v16 = vsub.f32 %v2349_v1, %v2361_v10  ;;  %v2339_v17 = vmul.f32 %v4149_v11, %v2327_v62 }
 0xb5f   :  { %2468 = vperm.xlu1 %4118, %v2370_v54   ;;  %2473 = vperm.xlu0 %4119, %v2371_v55   ;;  %v2362_v22 = vmul.f32 %v2338_v28, %v5341_v38 }
 0xb60   :  { %v2363_v5 = vmul.f32 %v2339_v17, %v5343_v39 }
 0xb61   :  { %v4151_v6 = vpop.eup %4150  ;;  %v2374_v30 = vsub.f32 %v2350_v21, %v2362_v22 }
 0xb62   :  { %v2375_v33 = vsub.f32 %v2351_v26, %v2363_v5  ;;  %v2340_v38 = vmul.f32 %v4151_v6, %v2328_v8 }
 0xb63   :  { %2406 = vperm.xlu1 %4118, %v2336_v56   ;;  %2411 = vperm.xlu0 %4119, %v2337_v3   ;;  %v4153_v24 = vpop.eup %4152 }
 0xb64   :  { %v2341_v12 = vmul.f32 %v4153_v24, %v2329_v29  ;;  %v2364_v39 = vmul.f32 %v2340_v38, %v5351_v52 }
 0xb66   :  { %v2365_v34 = vmul.f32 %v2341_v12, %v5353_v53  ;;  %v2376_v0 = vsub.f32 %v2352_v35, %v2364_v39  ;;  %v2700_v53 = vld [vmem:[#allocation2] sm:$0x1] }
 0xb67   :  { %2478 = vperm.xlu1 %4118, %v2372_v27   ;;  %2483 = vperm.xlu0 %4119, %v2373_v16   ;;  %v4155_v15 = vpop.eup %4154 }
 0xb68   :  { %v2377_v41 = vsub.f32 %v2353_v4, %v2365_v34  ;;  %v2342_v52 = vmul.f32 %v4155_v15, %v2330_v63 }
 0xb6a   :  { %v2366_v43 = vmul.f32 %v2342_v52, %v5361_v2 }
 0xb6b   :  { %2416 = vperm.xlu1 %4118, %v2338_v28   ;;  %2421 = vperm.xlu0 %4119, %v2339_v17  }
 0xb6c   :  { %v2378_v46 = vsub.f32 %v2354_v45, %v2366_v43 }
 0xb6f   :  { %2488 = vperm.xlu1 %4118, %v2374_v30   ;;  %2493 = vperm.xlu0 %4119, %v2375_v33  }
 0xb73   :  { %2426 = vperm.xlu1 %4118, %v2340_v38   ;;  %2431 = vperm.xlu0 %4119, %v2341_v12  }
 0xb77   :  { %2498 = vperm.xlu1 %4118, %v2376_v0   ;;  %2503 = vperm.xlu0 %4119, %v2377_v41  }
 0xb7b   :  { %2436 = vperm.xlu1 %4118, %v2342_v52   ;;  %2703 = vperm.xlu0 %4119, %v2700_v53  }
 0xb7f   :  { %2508 = vperm.xlu1 %4118, %v2378_v46  }
 0xbcd   :  { %v2387_v18 = vpop.permute.xlu0 %2386 }
 0xbce   :  { %v2382_v47 = vpop.permute.xlu1 %2381  ;;  %v2440_v54 = vmul.f32 %v2387_v18, %v5260_v23 }
 0xbcf   :  { %v2439_v55 = vmul.f32 %v2382_v47, %v5262_v25 }
 0xbd2   :  { %v2392_v49 = vpop.permute.xlu0 %2391  ;;  %v2459_v51 = vpop.permute.xlu1 %2458 }
 0xbd3   :  { %v2441_v2 = vmul.f32 %v2392_v49, %v5268_v31  ;;  %v2512_v56 = vadd.f32 %v2459_v51, %v2440_v54 }
 0xbd5   :  { %v2524_v11 = vmax.f32 %v2512_v56, 0.0 }
 0xbd6   :  { %v2464_v19 = vpop.permute.xlu0 %2463  ;;  %v2397_v20 = vpop.permute.xlu1 %2396 }
 0xbd7   :  { %v2513_v60 = vadd.f32 %v2464_v19, %v2441_v2  ;;  %v2442_v7 = vmul.f32 %v2397_v20, %v5270_v32 }
 0xbd9   :  { %v2525_v62 = vmax.f32 %v2513_v60, 0.0 }
 0xbda   :  { %v2402_v3 = vpop.permute.xlu0 %2401  ;;  %v2454_v59 = vpop.permute.xlu1 %2453 }
 0xbdb   :  { %v2511_v61 = vadd.f32 %v2454_v59, %v2439_v55  ;;  %v2443_v9 = vmul.f32 %v2402_v3, %v5274_v36 }
 0xbdd   :  { %v2523_v10 = vmax.f32 %v2511_v61, 0.0 }
 0xbde   :  { %v2474_v1 = vpop.permute.xlu0 %2473  ;;  %v2469_v13 = vpop.permute.xlu1 %2468 }
 0xbdf   :  { %v2515_v14 = vadd.f32 %v2474_v1, %v2443_v9  ;;  %v2514_v23 = vadd.f32 %v2469_v13, %v2442_v7  ;;  %3665 = vmatprep.mubr.msk.f32.mxu1 %vm2174_vm13, %v2523_v10 }
 0xbe0   :  { %3666 = vmatmul.mubr.msk.f32.vlgmr.msra.gmra.mrb[24].mxu1 %vm2174_vm13, %v2524_v11  ;;  %v2699_v11 = vld [vmem:[%s5521_s19] sm:$0x1]  ;;  %s4160_s19 = scalar_lea.vmem %s2798_s12, 16 }
 0xbe1   :  { %v2526_v25 = vmax.f32 %v2514_v23, 0.0  ;;  %3668 = vmatprep.mubr.msk.f32.mxu1 %vm2174_vm13, %v2525_v62  ;;  %v2527_v16 = vmax.f32 %v2515_v14, 0.0  ;;  %p4161_p0 = scmp.ne.s32.totalorder %s2798_s12, %s4160_s19  ;;  %p4166_p2 = scmp.lt.s32.totalorder %s4164_s28, %s4160_s19 }
 0xbe2   :  { %v2412_v31 = vpop.permute.xlu0 %2411  ;;  %v2407_v27 = vpop.permute.xlu1 %2406 }
 0xbe3   :  { %v2445_v32 = vmul.f32 %v2412_v31, %v5282_v42  ;;  %v2444_v36 = vmul.f32 %v2407_v27, %v5276_v37  ;;  %p4167_p3 = por %p4166_p2, %p4165_p1 }
 0xbe4   :  { %3669 = vmatmul.mubr.msk.f32.gmra.mrb[26].mxu1 %vm2174_vm13, %v2526_v25 }
 0xbe5   :  { %3671 = vmatprep.mubr.msk.f32.mxu1 %vm2174_vm13, %v2527_v16  ;;  %p4168_p4 = pnand %p4167_p3, %p4161_p0 }
 0xbe6   :  { %v2484_v28 = vpop.permute.xlu0 %2483  ;;  %v2479_v17 = vpop.permute.xlu1 %2478 }
 0xbe7   :  { %v2517_v6 = vadd.f32 %v2484_v28, %v2445_v32  ;;  %v2516_v21 = vadd.f32 %v2479_v17, %v2444_v36 }
 0xbe9   :  { %v2529_v22 = vmax.f32 %v2517_v6, 0.0  ;;  %v2528_v5 = vmax.f32 %v2516_v21, 0.0 }
 0xbea   :  { %v2422_v24 = vpop.permute.xlu0 %2421  ;;  %v2417_v26 = vpop.permute.xlu1 %2416 }
 0xbeb   :  { %3672 = vmatmul.mubr.msk.f32.gmra.mrb[28].mxu1 %vm2174_vm13, %v2528_v5  ;;  %v2447_v8 = vmul.f32 %v2422_v24, %v5290_v50  ;;  %v2446_v42 = vmul.f32 %v2417_v26, %v5284_v44 }
 0xbec   :  { %3674 = vmatprep.mubr.msk.f32.mxu1 %vm2174_vm13, %v2529_v22 }
 0xbee   :  { %v2494_v29 = vpop.permute.xlu0 %2493  ;;  %v2489_v37 = vpop.permute.xlu1 %2488 }
 0xbef   :  { %v2519_v30 = vadd.f32 %v2494_v29, %v2447_v8  ;;  %v2518_v33 = vadd.f32 %v2489_v37, %v2446_v42 }
 0xbf1   :  { %v2531_v38 = vmax.f32 %v2519_v30, 0.0  ;;  %v2530_v12 = vmax.f32 %v2518_v33, 0.0 }
 0xbf2   :  { %v2432_v39 = vpop.permute.xlu0 %2431  ;;  %v2427_v34 = vpop.permute.xlu1 %2426 }
 0xbf3   :  { %3675 = vmatmul.mubr.msk.f32.gmra.mrb[30].mxu1 %vm2174_vm13, %v2530_v12  ;;  %v2449_v15 = vmul.f32 %v2432_v39, %v5298_v58  ;;  %v2448_v35 = vmul.f32 %v2427_v34, %v5292_v48  ;;  %v4188_v58 = vmov 0.0|0.0   ;;  %v4190_v48 = vmov 0.0  }
 0xbf4   :  { %3677 = vmatprep.mubr.msk.f32.mxu1 %vm2174_vm13, %v2531_v38  ;;  %4086 = vmatprep.subr.bf16.mxu1 %v4188_v58 }
 0xbf6   :  { %v2504_v4 = vpop.permute.xlu0 %2503  ;;  %v2499_v50 = vpop.permute.xlu1 %2498 }
 0xbf7   :  { %v2521_v63 = vadd.f32 %v2504_v4, %v2449_v15  ;;  %v2520_v44 = vadd.f32 %v2499_v50, %v2448_v35 }
 0xbf9   :  { %v2533_v0 = vmax.f32 %v2521_v63, 0.0  ;;  %v2532_v41 = vmax.f32 %v2520_v44, 0.0 }
 0xbfa   :  { %v2437_v52 = vpop.permute.xlu1 %2436  ;;  %v2704_v1 = vpop.permute.xlu0 %2703 }
 0xbfb   :  { %3678 = vmatmul.mubr.msk.f32.gmra.mrb[32].mxu1 %vm2174_vm13, %v2532_v41  ;;  %v2450_v53 = vmul.f32 %v2437_v52, %v5300_v57  ;;  %v2709_v13 = vrot.slane %v2704_v1, %v4508_v40 }
 0xbfc   :  { %3680 = vmatprep.mubr.msk.f32.mxu1 %vm2174_vm13, %v2533_v0 }
 0xbfe   :  { %v2509_v43 = vpop.permute.xlu1 %2508 }
 0xbff   :  { %v2522_v45 = vadd.f32 %v2509_v43, %v2450_v53 }
 0xc01   :  { %v2534_v46 = vmax.f32 %v2522_v45, 0.0 }
 0xc03   :  { %3681 = vmatmul.mubr.msk.f32.gmra.mrb[34].mxu1 %vm2174_vm13, %v2534_v46 }
 0xc04   :  { %3707 = vmatprep.mubr.msk.f32.mxu1 %vm4189_vm14, %v4190_v48 }
 0xcb3   :  { %v3667_v18 = vpop.f32.mrb[24].mxu1 }
 0xcb4   :  { %v2640_v47 = vpop.f32.mrb[25].mxu1 }
 0xcb5   :  { %v4087_v49 = vpack.c.bf16 %v3667_v18, %v2640_v47 }
 0xcb7   :  { %v3670_v51 = vpop.f32.mrb[26].mxu1  ;;  %4088 = vmatpush3.bf16.msra.mxu1 %v4087_v49 }
 0xcb8   :  { %v2650_v19 = vpop.f32.mrb[27].mxu1  ;;  %4089 = vmatprep.subr.bf16.mxu1 %v4188_v58 }
 0xcb9   :  { %v4090_v20 = vpack.c.bf16 %v3670_v51, %v2650_v19 }
 0xcbb   :  { %4091 = vmatpush3.bf16.msra.mxu1 %v4090_v20 }
 0xcbc   :  { %4092 = vmatprep.subr.bf16.mxu1 %v4188_v58 }
 0xcbe   :  { %v3673_v57 = vpop.f32.mrb[28].mxu1 }
 0xcbf   :  { %v2660_v54 = vpop.f32.mrb[29].mxu1 }
 0xcc0   :  { %v4093_v55 = vpack.c.bf16 %v3673_v57, %v2660_v54 }
 0xcc2   :  { %4094 = vmatpush3.bf16.msra.mxu1 %v4093_v55 }
 0xcc3   :  { %4095 = vmatprep.subr.bf16.mxu1 %v4188_v58 }
 0xcc6   :  { %v3676_v2 = vpop.f32.mrb[30].mxu1 }
 0xcc7   :  { %v2670_v56 = vpop.f32.mrb[31].mxu1 }
 0xcc8   :  { %v4096_v3 = vpack.c.bf16 %v3676_v2, %v2670_v56 }
 0xcca   :  { %4097 = vmatpush3.bf16.msra.mxu1 %v4096_v3 }
 0xccb   :  { %4098 = vmatprep.subr.bf16.mxu1 %v4188_v58 }
 0xcce   :  { %v3679_v59 = vpop.f32.mrb[32].mxu1 }
 0xccf   :  { %v2680_v60 = vpop.f32.mrb[33].mxu1 }
 0xcd0   :  { %v4099_v61 = vpack.c.bf16 %v3679_v59, %v2680_v60 }
 0xcd2   :  { %4100 = vmatpush3.bf16.msra.mxu1 %v4099_v61 }
 0xcd3   :  { %4101 = vmatprep.subr.bf16.mxu1 %v4188_v58 }
 0xcd6   :  { %v3682_v7 = vpop.f32.mrb[34].mxu1 }
 0xcd7   :  { %v2690_v9 = vpop.f32.mrb[35].mxu1 }
 0xcd8   :  { %v4102_v10 = vpack.c.bf16 %v3682_v7, %v2690_v9 }
 0xcda   :  { %4103 = vmatpush3.bf16.msra.mxu1 %v4102_v10 }
 0xcdd   :  { %3708 = vmatmul.mubr.msk.f32.vlgmr.msra.gmra.mrb[36].mxu1 %vm2012_vm12, %v2699_v11 }
 0xdb0   :  { %v2779_v62 = vpop.f32.mrb[36].mxu1 }
 0xdb1   :  { %v2780_v14 = vadd.f32 %v2779_v62, %v2709_v13  ;;  %v3709_v23 = vpop.f32.mrb[37].mxu1 }
 0xdb3   :  { %v2783_v25 = vsub.f32 0.0, %v2780_v14 }
 0xdb5   :  { %v2784_v31 = vmul.f32 1.442695, %v2783_v25 }
 0xdb7   :  { %4156 = vpow2.f32 %v2784_v31 }
 0xdc1   :  { %v4157_v27 = vpop.eup %4156 }
 0xdc2   :  { %v2786_v16 = vadd.f32 1.0, %v4157_v27 }
 0xdc4   :  { %4158 = vrcp.f32 %v2786_v16 }
 0xdce   :  { %v4159_v32 = vpop.eup %4158 }
 0xdcf   :  { %2790 = vst.msk [vmem:[#allocation3] sm:$0x1] %vm2789_vm15, %v4159_v32 }
 0xdd0   :  { %4171 = shalt.err (!%p4168_p4)
}
 0xdd1   :  { %s4172_s13 = scalar_lea.hbm %s5523_s21, 16 }
 0xdd2   :  { %p4173_p5 = scmp.ne.s32.totalorder %s5523_s21, %s4172_s13  ;;  %p4176_p6 = scmp.lt.u32.totalorder %s4172_s13, %s5523_s21 }
 0xdd4   :  { %p4178_p7 = pnand %p4176_p6, %p4173_p5 }
 0xdd6   :  { %4181 = shalt.err (!%p4178_p7)
}
 0xdd7   :  { %2800 = dma.vmem_to_hbm [thread:$0]  %s2798_s12, 16, %s5523_s21, [#allocation4]  }
 0xdd8   :  { %4182 = dma.done.wait [#allocation4], 16  }
 0xdd9   :  { %4183 = vsyncadd [#allocation4], 4294967280 }
 0xdda   :  { %2804 = vsyncpa [#allocation4], 1 }

</bundles_post_ra>
